<compile_context>
chip_gen: v7x
topology: tpu7x:2x2x1
jax: 0.10.0
libtpu: 0.0.40
codegen_flags: <defaults>
</compile_context>

<pallas_src>
import jax
import jax.numpy as jnp
from jax.experimental import pallas as pl
from jax.experimental.pallas import tpu as pltpu


NEG_INF = -1e30   # "no edge" sentinel folded into the logits in the wrapper
M_FLOOR = -1e29   # floor for the running row max (above sentinel, below real logits)
TILE_N = 128      # src/dst tile size (re-derive per TPU generation / graph size)
LANE = 128        # feature dim padded to a multiple of the 128-lane vreg width
VMEM_LIMIT = 32 * 1024 * 1024


def _round_up(x, m):
    return (x + m - 1) // m * m


def _stats_kernel(wm_ref, feat_ref, sh_ref, m_ref, m_sc, l_sc):
    """Per-source softmax stats (online max/sum over dst tiles) + pre-scaled features."""
    j = pl.program_id(1)  # dst tile (reduction axis, innermost)

    @pl.when(j == 0)
    def _():
        m_sc[...] = jnp.full_like(m_sc, M_FLOOR)
        l_sc[...] = jnp.zeros_like(l_sc)

    tile = wm_ref[...]                                    # (TILE_N, TILE_N) logits
    t_max = jnp.max(tile, axis=-1, keepdims=True)         # (TILE_N, 1)
    m_new = jnp.maximum(m_sc[...], t_max)
    alpha = jnp.exp(m_sc[...] - m_new)
    p = jnp.exp(tile - m_new)                             # masked entries underflow to 0
    l_sc[...] = alpha * l_sc[...] + jnp.sum(p, axis=-1, keepdims=True)
    m_sc[...] = m_new

    @pl.when(j == pl.num_programs(1) - 1)
    def _():
        feat = feat_ref[...]                                        # (TILE_N, Dp)
        sq = jnp.sum(feat * feat, axis=-1, keepdims=True)           # (TILE_N, 1)
        # F.normalize(p=2, eps=1e-12): x / max(||x||, 1e-12), done as a multiply.
        inv_norm = pl.reciprocal(jnp.maximum(jnp.sqrt(sq), jnp.float32(1e-12)))
        inv_l = pl.reciprocal(jnp.maximum(l_sc[...], jnp.float32(1e-30)))
        # Two-step scale keeps padded / edge-less rows finite (0 * big stays 0).
        sh_ref[...] = (feat * inv_norm) * inv_l
        m_ref[...] = m_sc[...]


def _aggregate_kernel(wm_ref, m_ref, sh_ref, feat_ref, eps_ref, out_ref, acc_sc):
    """h[v] = sum_u exp(e[u,v] - m[u]) * scaled_h[u];  out = (1 + eps) * feat + h."""
    k = pl.program_id(1)  # src tile (reduction axis, innermost)

    @pl.when(k == 0)
    def _():
        acc_sc[...] = jnp.zeros_like(acc_sc)

    p_un = jnp.exp(wm_ref[...] - m_ref[...])              # (TILE_src, TILE_dst)
    # Explicit per-block transpose (XLU) -> contiguous [dst, src] x [src, D] MXU feed.
    acc_sc[...] += jnp.dot(p_un.T, sh_ref[...], preferred_element_type=jnp.float32)

    @pl.when(k == pl.num_programs(1) - 1)
    def _():
        eps = eps_ref[0]
        out_ref[...] = ((jnp.float32(1.0) + eps) * feat_ref[...]
                        + acc_sc[...]).astype(out_ref.dtype)


@jax.jit
def agnn_conv(feat, edge_w, edge_mask, beta, eps):
    """feat: [N, D] f32; edge_w/edge_mask: [N_src, N_dst] = [N, N] f32; beta/eps: [1] f32."""
    N, D = feat.shape
    Np = _round_up(N, TILE_N)
    Dp = _round_up(D, LANE)
    n_tiles = Np // TILE_N

    # Fold learnable beta and the edge mask into the logits once (one fused XLA
    # elementwise pass); kernels then stream a single [N, N] array with no masking.
    wm = jnp.where(edge_mask > 0, beta[0] * edge_w, jnp.float32(NEG_INF))
    wm = jnp.pad(wm, ((0, Np - N), (0, Np - N)), constant_values=NEG_INF)
    feat_p = jnp.pad(feat.astype(jnp.float32), ((0, Np - N), (0, Dp - D)))

    # ---- pass 1: per-source row max + features pre-scaled by 1/(||.|| * denom) ----
    scaled_h, m_out = pl.pallas_call(
        _stats_kernel,
        out_shape=(jax.ShapeDtypeStruct((Np, Dp), jnp.float32),
                   jax.ShapeDtypeStruct((Np, 1), jnp.float32)),
        grid_spec=pltpu.PrefetchScalarGridSpec(
            num_scalar_prefetch=0,
            grid=(n_tiles, n_tiles),                                    # (src, dst)
            in_specs=[
                pl.BlockSpec((TILE_N, TILE_N), lambda i, j: (i, j)),    # logits tile
                pl.BlockSpec((TILE_N, Dp), lambda i, j: (i, 0)),        # feat (resident per i)
            ],
            out_specs=[
                pl.BlockSpec((TILE_N, Dp), lambda i, j: (i, 0)),        # scaled_h
                pl.BlockSpec((TILE_N, 1), lambda i, j: (i, 0)),         # row max
            ],
            scratch_shapes=[pltpu.VMEM((TILE_N, 1), jnp.float32),       # running max
                            pltpu.VMEM((TILE_N, 1), jnp.float32)],      # running denom
        ),
        compiler_params=pltpu.CompilerParams(
            dimension_semantics=("parallel", "arbitrary"),
            vmem_limit_bytes=VMEM_LIMIT),
    )(wm, feat_p)

    # ---- pass 2: h = exp(e - m)^T @ scaled_h, with fused (1 + eps) * feat residual ----
    out_p = pl.pallas_call(
        _aggregate_kernel,
        out_shape=jax.ShapeDtypeStruct((Np, Dp), jnp.float32),
        grid_spec=pltpu.PrefetchScalarGridSpec(
            num_scalar_prefetch=0,
            grid=(n_tiles, n_tiles),                                    # (dst, src)
            in_specs=[
                pl.BlockSpec((TILE_N, TILE_N), lambda j, k: (k, j)),    # logits tile
                pl.BlockSpec((TILE_N, 1), lambda j, k: (k, 0)),         # row max
                pl.BlockSpec((TILE_N, Dp), lambda j, k: (k, 0)),        # scaled_h
                pl.BlockSpec((TILE_N, Dp), lambda j, k: (j, 0)),        # feat (residual)
                pl.BlockSpec(memory_space=pltpu.MemorySpace.SMEM),      # eps scalar
            ],
            out_specs=pl.BlockSpec((TILE_N, Dp), lambda j, k: (j, 0)),
            scratch_shapes=[pltpu.VMEM((TILE_N, Dp), jnp.float32)],     # h accumulator
        ),
        compiler_params=pltpu.CompilerParams(
            dimension_semantics=("parallel", "arbitrary"),
            vmem_limit_bytes=VMEM_LIMIT),
    )(wm, m_out, scaled_h, feat_p, eps)

    return out_p[:N, :D]


def agnn_ref(feat, edge_w, edge_mask, beta, eps):
    """Pure-JAX reference for validation."""
    norm = jnp.sqrt(jnp.sum(feat * feat, axis=-1, keepdims=True))
    norm_h = feat / jnp.maximum(norm, 1e-12)
    e = jnp.where(edge_mask > 0, beta[0] * edge_w, -1e30)
    row_max = jnp.max(e, axis=-1, keepdims=True)
    exp_e = jnp.where(edge_mask > 0, jnp.exp(beta[0] * edge_w - row_max), 0.0)
    p = exp_e / jnp.maximum(jnp.sum(exp_e, axis=-1, keepdims=True), 1e-30)
    h = p.T @ norm_h
    return (1.0 + eps[0]) * feat + h


if __name__ == "__main__":
    N, D = 256, 32  # small graph: 256 nodes, 32-dim node features (2x2 tile grid)

    key = jax.random.PRNGKey(0)
    k_feat, k_w, k_mask = jax.random.split(key, 3)

    feat = jax.random.normal(k_feat, (N, D), dtype=jnp.float32)
    edge_w = jax.random.normal(k_w, (N, N), dtype=jnp.float32)
    edge_mask = (jax.random.uniform(k_mask, (N, N)) < 0.3).astype(jnp.float32)

    # Parameters (module __init__: beta shape (1,), eps shape (1,)); deterministic init.
    beta = jnp.array([1.0], dtype=jnp.float32)   # init_beta = 1
    eps = jnp.array([0.0], dtype=jnp.float32)    # eps = 0.0

    out = jax.block_until_ready(agnn_conv(feat, edge_w, edge_mask, beta, eps))
    ref = agnn_ref(feat, edge_w, edge_mask, beta, eps)

    if not jnp.allclose(out, ref, atol=1e-4, rtol=1e-4):
        err = jnp.max(jnp.abs(out - ref))
        raise AssertionError(f"Pallas AGNNConv does not match JAX reference (max err {err})")

    print("KERNEL_OK")
</pallas_src>

<mosaic_0001>
module attributes {stable_mosaic.version = 11 : i64} {
  func.func @_stats_kernel(%arg0: i32, %arg1: i32, %arg2: memref<128x128xf32, #tpu.memory_space<vmem>>, %arg3: memref<128x128xf32, #tpu.memory_space<vmem>>, %arg4: memref<128x128xf32, #tpu.memory_space<vmem>>, %arg5: memref<128x1xf32, #tpu.memory_space<vmem>>, %arg6: memref<128x1xf32, #tpu.memory_space<vmem>>, %arg7: memref<128x1xf32, #tpu.memory_space<vmem>>) attributes {dimension_semantics = [#tpu.dimension_semantics<parallel>, #tpu.dimension_semantics<arbitrary>], iteration_bounds = array<i64: 2, 2>, scalar_prefetch = 0 : i64, scratch_operands = 2 : i64, tpu.core_type = #tpu.core_type<tc>, window_params = [{transform_indices = @transform_0, window_bounds = array<i64: 128, 128>}, {transform_indices = @transform_1, window_bounds = array<i64: 128, 128>}, {transform_indices = @transform_2, window_bounds = array<i64: 128, 128>}, {transform_indices = @transform_3, window_bounds = array<i64: 128, 1>}]} {
    %c0_i32 = arith.constant 0 : i32
    %0 = arith.cmpi eq, %arg1, %c0_i32 : i32
    %1 = arith.extui %0 : i1 to i32
    %c0_i32_0 = arith.constant 0 : i32
    %2 = arith.cmpi ne, %1, %c0_i32_0 : i32
    scf.if %2 {
      %cst_14 = arith.constant -1.000000e+29 : f32
      %24 = vector.broadcast %cst_14 : f32 to vector<128x1xf32>
      %c0_15 = arith.constant 0 : index
      %c0_16 = arith.constant 0 : index
      %25 = vector.load %arg6[%c0_15, %c0_16] : memref<128x1xf32, #tpu.memory_space<vmem>>, vector<128x1xf32>
      tpu.vector_store %arg6[%c0_15, %c0_16], %24 {strides = array<i32>} : memref<128x1xf32, #tpu.memory_space<vmem>>, vector<128x1xf32>,
      %cst_17 = arith.constant 0.000000e+00 : f32
      %26 = vector.broadcast %cst_17 : f32 to vector<128x1xf32>
      %c0_18 = arith.constant 0 : index
      %c0_19 = arith.constant 0 : index
      %27 = vector.load %arg7[%c0_18, %c0_19] : memref<128x1xf32, #tpu.memory_space<vmem>>, vector<128x1xf32>
      tpu.vector_store %arg7[%c0_18, %c0_19], %26 {strides = array<i32>} : memref<128x1xf32, #tpu.memory_space<vmem>>, vector<128x1xf32>,
    } else {
    }
    %c0 = arith.constant 0 : index
    %c0_1 = arith.constant 0 : index
    %3 = vector.load %arg2[%c0, %c0_1] : memref<128x128xf32, #tpu.memory_space<vmem>>, vector<128x128xf32>
    %cst = arith.constant dense<0xFF800000> : vector<128xf32>
    %4 = vector.multi_reduction <maximumf>, %3, %cst [1] : vector<128x128xf32> to vector<128xf32>
    %5 = vector.shape_cast %4 : vector<128xf32> to vector<128x1xf32>
    %c0_2 = arith.constant 0 : index
    %c0_3 = arith.constant 0 : index
    %6 = vector.load %arg6[%c0_2, %c0_3] : memref<128x1xf32, #tpu.memory_space<vmem>>, vector<128x1xf32>
    %7 = arith.maximumf %6, %5 : vector<128x1xf32>
    %c0_4 = arith.constant 0 : index
    %c0_5 = arith.constant 0 : index
    %8 = vector.load %arg6[%c0_4, %c0_5] : memref<128x1xf32, #tpu.memory_space<vmem>>, vector<128x1xf32>
    %9 = arith.subf %8, %7 : vector<128x1xf32>
    %10 = math.exp %9 : vector<128x1xf32>
    %11 = vector.broadcast %7 : vector<128x1xf32> to vector<128x128xf32>
    %12 = arith.subf %3, %11 : vector<128x128xf32>
    %13 = math.exp %12 : vector<128x128xf32>
    %c0_6 = arith.constant 0 : index
    %c0_7 = arith.constant 0 : index
    %14 = vector.load %arg7[%c0_6, %c0_7] : memref<128x1xf32, #tpu.memory_space<vmem>>, vector<128x1xf32>
    %15 = arith.mulf %10, %14 : vector<128x1xf32>
    %cst_8 = arith.constant dense<0.000000e+00> : vector<128xf32>
    %16 = vector.multi_reduction <add>, %13, %cst_8 [1] : vector<128x128xf32> to vector<128xf32>
    %17 = vector.shape_cast %16 : vector<128xf32> to vector<128x1xf32>
    %18 = arith.addf %15, %17 : vector<128x1xf32>
    %c0_9 = arith.constant 0 : index
    %c0_10 = arith.constant 0 : index
    %19 = vector.load %arg7[%c0_9, %c0_10] : memref<128x1xf32, #tpu.memory_space<vmem>>, vector<128x1xf32>
    tpu.vector_store %arg7[%c0_9, %c0_10], %18 {strides = array<i32>} : memref<128x1xf32, #tpu.memory_space<vmem>>, vector<128x1xf32>,
    %c0_11 = arith.constant 0 : index
    %c0_12 = arith.constant 0 : index
    %20 = vector.load %arg6[%c0_11, %c0_12] : memref<128x1xf32, #tpu.memory_space<vmem>>, vector<128x1xf32>
    tpu.vector_store %arg6[%c0_11, %c0_12], %7 {strides = array<i32>} : memref<128x1xf32, #tpu.memory_space<vmem>>, vector<128x1xf32>,
    %c1_i32 = arith.constant 1 : i32
    %21 = arith.cmpi eq, %arg1, %c1_i32 : i32
    %22 = arith.extui %21 : i1 to i32
    %c0_i32_13 = arith.constant 0 : i32
    %23 = arith.cmpi ne, %22, %c0_i32_13 : i32
    scf.if %23 {
      %c0_14 = arith.constant 0 : index
      %c0_15 = arith.constant 0 : index
      %24 = vector.load %arg3[%c0_14, %c0_15] : memref<128x128xf32, #tpu.memory_space<vmem>>, vector<128x128xf32>
      %25 = arith.mulf %24, %24 : vector<128x128xf32>
      %cst_16 = arith.constant dense<0.000000e+00> : vector<128xf32>
      %26 = vector.multi_reduction <add>, %25, %cst_16 [1] : vector<128x128xf32> to vector<128xf32>
      %27 = vector.shape_cast %26 : vector<128xf32> to vector<128x1xf32>
      %28 = math.sqrt %27 : vector<128x1xf32>
      %cst_17 = arith.constant 9.99999996E-13 : f32
      %29 = vector.broadcast %cst_17 : f32 to vector<128x1xf32>
      %30 = arith.maximumf %28, %29 : vector<128x1xf32>
      %31 = tpu.reciprocal %30 : vector<128x1xf32> -> vector<128x1xf32>
      %c0_18 = arith.constant 0 : index
      %c0_19 = arith.constant 0 : index
      %32 = vector.load %arg7[%c0_18, %c0_19] : memref<128x1xf32, #tpu.memory_space<vmem>>, vector<128x1xf32>
      %cst_20 = arith.constant 1.000000e-30 : f32
      %33 = vector.broadcast %cst_20 : f32 to vector<128x1xf32>
      %34 = arith.maximumf %32, %33 : vector<128x1xf32>
      %35 = tpu.reciprocal %34 : vector<128x1xf32> -> vector<128x1xf32>
      %36 = vector.broadcast %31 : vector<128x1xf32> to vector<128x128xf32>
      %37 = arith.mulf %24, %36 : vector<128x128xf32>
      %38 = vector.broadcast %35 : vector<128x1xf32> to vector<128x128xf32>
      %39 = arith.mulf %37, %38 : vector<128x128xf32>
      %c0_21 = arith.constant 0 : index
      %c0_22 = arith.constant 0 : index
      %40 = vector.load %arg4[%c0_21, %c0_22] : memref<128x128xf32, #tpu.memory_space<vmem>>, vector<128x128xf32>
      tpu.vector_store %arg4[%c0_21, %c0_22], %39 {strides = array<i32>} : memref<128x128xf32, #tpu.memory_space<vmem>>, vector<128x128xf32>,
      %c0_23 = arith.constant 0 : index
      %c0_24 = arith.constant 0 : index
      %41 = vector.load %arg6[%c0_23, %c0_24] : memref<128x1xf32, #tpu.memory_space<vmem>>, vector<128x1xf32>
      %c0_25 = arith.constant 0 : index
      %c0_26 = arith.constant 0 : index
      %42 = vector.load %arg5[%c0_25, %c0_26] : memref<128x1xf32, #tpu.memory_space<vmem>>, vector<128x1xf32>
      tpu.vector_store %arg5[%c0_25, %c0_26], %41 {strides = array<i32>} : memref<128x1xf32, #tpu.memory_space<vmem>>, vector<128x1xf32>,
    } else {
    }
    return
  }
  func.func @transform_0(%arg0: i32, %arg1: i32) -> (i32, i32) {
    %c0_i32 = arith.constant 0 : i32
    return %arg0, %arg1 : i32, i32
  }
  func.func @transform_1(%arg0: i32, %arg1: i32) -> (i32, i32) {
    %c0_i32 = arith.constant 0 : i32
    %c0_i32_0 = arith.constant 0 : i32
    return %arg0, %c0_i32 : i32, i32
  }
  func.func @transform_2(%arg0: i32, %arg1: i32) -> (i32, i32) {
    %c0_i32 = arith.constant 0 : i32
    %c0_i32_0 = arith.constant 0 : i32
    return %arg0, %c0_i32 : i32, i32
  }
  func.func @transform_3(%arg0: i32, %arg1: i32) -> (i32, i32) {
    %c0_i32 = arith.constant 0 : i32
    %c0_i32_0 = arith.constant 0 : i32
    return %arg0, %c0_i32 : i32, i32
  }
}

module attributes {stable_mosaic.version = 11 : i64} {
  func.func @_aggregate_kernel(%arg0: i32, %arg1: i32, %arg2: memref<128x128xf32, #tpu.memory_space<vmem>>, %arg3: memref<128x1xf32, #tpu.memory_space<vmem>>, %arg4: memref<128x128xf32, #tpu.memory_space<vmem>>, %arg5: memref<128x128xf32, #tpu.memory_space<vmem>>, %arg6: memref<1xf32, #tpu.memory_space<smem>>, %arg7: memref<128x128xf32, #tpu.memory_space<vmem>>, %arg8: memref<128x128xf32, #tpu.memory_space<vmem>>) attributes {dimension_semantics = [#tpu.dimension_semantics<parallel>, #tpu.dimension_semantics<arbitrary>], iteration_bounds = array<i64: 2, 2>, scalar_prefetch = 0 : i64, scratch_operands = 1 : i64, tpu.core_type = #tpu.core_type<tc>, window_params = [{transform_indices = @transform_0, window_bounds = array<i64: 128, 128>}, {transform_indices = @transform_1, window_bounds = array<i64: 128, 1>}, {transform_indices = @transform_2, window_bounds = array<i64: 128, 128>}, {transform_indices = @transform_3, window_bounds = array<i64: 128, 128>}, {transform_indices = @transform_4, window_bounds = array<i64: 1>}, {transform_indices = @transform_5, window_bounds = array<i64: 128, 128>}]} {
    %c0_i32 = arith.constant 0 : i32
    %0 = arith.cmpi eq, %arg1, %c0_i32 : i32
    %1 = arith.extui %0 : i1 to i32
    %c0_i32_0 = arith.constant 0 : i32
    %2 = arith.cmpi ne, %1, %c0_i32_0 : i32
    scf.if %2 {
      %cst_11 = arith.constant 0.000000e+00 : f32
      %17 = vector.broadcast %cst_11 : f32 to vector<128x128xf32>
      %c0_12 = arith.constant 0 : index
      %c0_13 = arith.constant 0 : index
      %18 = vector.load %arg8[%c0_12, %c0_13] : memref<128x128xf32, #tpu.memory_space<vmem>>, vector<128x128xf32>
      tpu.vector_store %arg8[%c0_12, %c0_13], %17 {strides = array<i32>} : memref<128x128xf32, #tpu.memory_space<vmem>>, vector<128x128xf32>,
    } else {
    }
    %c0 = arith.constant 0 : index
    %c0_1 = arith.constant 0 : index
    %3 = vector.load %arg2[%c0, %c0_1] : memref<128x128xf32, #tpu.memory_space<vmem>>, vector<128x128xf32>
    %c0_2 = arith.constant 0 : index
    %c0_3 = arith.constant 0 : index
    %4 = vector.load %arg3[%c0_2, %c0_3] : memref<128x1xf32, #tpu.memory_space<vmem>>, vector<128x1xf32>
    %5 = vector.broadcast %4 : vector<128x1xf32> to vector<128x128xf32>
    %6 = arith.subf %3, %5 : vector<128x128xf32>
    %7 = math.exp %6 : vector<128x128xf32>
    %c0_4 = arith.constant 0 : index
    %c0_5 = arith.constant 0 : index
    %8 = vector.load %arg8[%c0_4, %c0_5] : memref<128x128xf32, #tpu.memory_space<vmem>>, vector<128x128xf32>
    %9 = tpu.transpose %7, [1, 0] : vector<128x128xf32> -> vector<128x128xf32>
    %c0_6 = arith.constant 0 : index
    %c0_7 = arith.constant 0 : index
    %10 = vector.load %arg4[%c0_6, %c0_7] : memref<128x128xf32, #tpu.memory_space<vmem>>, vector<128x128xf32>
    %cst = arith.constant dense<0.000000e+00> : vector<128x128xf32>
    %11 = tpu.matmul %9, %10, %cst {dimension_numbers = #tpu.dot_dimension_numbers<[1], [0], [0], [1], [0, 0, 1, 1], [], []>} : vector<128x128xf32>, vector<128x128xf32>, vector<128x128xf32> -> vector<128x128xf32>
    %12 = arith.addf %8, %11 : vector<128x128xf32>
    %c0_8 = arith.constant 0 : index
    %c0_9 = arith.constant 0 : index
    %13 = vector.load %arg8[%c0_8, %c0_9] : memref<128x128xf32, #tpu.memory_space<vmem>>, vector<128x128xf32>
    tpu.vector_store %arg8[%c0_8, %c0_9], %12 {strides = array<i32>} : memref<128x128xf32, #tpu.memory_space<vmem>>, vector<128x128xf32>,
    %c1_i32 = arith.constant 1 : i32
    %14 = arith.cmpi eq, %arg1, %c1_i32 : i32
    %15 = arith.extui %14 : i1 to i32
    %c0_i32_10 = arith.constant 0 : i32
    %16 = arith.cmpi ne, %15, %c0_i32_10 : i32
    scf.if %16 {
      %c0_11 = arith.constant 0 : index
      %17 = memref.load %arg6[%c0_11] : memref<1xf32, #tpu.memory_space<smem>>
      %cst_12 = arith.constant 1.000000e+00 : f32
      %18 = arith.addf %cst_12, %17 : f32
      %c0_13 = arith.constant 0 : index
      %c0_14 = arith.constant 0 : index
      %19 = vector.load %arg5[%c0_13, %c0_14] : memref<128x128xf32, #tpu.memory_space<vmem>>, vector<128x128xf32>
      %20 = vector.broadcast %18 : f32 to vector<128x128xf32>
      %21 = arith.mulf %20, %19 : vector<128x128xf32>
      %c0_15 = arith.constant 0 : index
      %c0_16 = arith.constant 0 : index
      %22 = vector.load %arg8[%c0_15, %c0_16] : memref<128x128xf32, #tpu.memory_space<vmem>>, vector<128x128xf32>
      %23 = arith.addf %21, %22 : vector<128x128xf32>
      %c0_17 = arith.constant 0 : index
      %c0_18 = arith.constant 0 : index
      %24 = vector.load %arg7[%c0_17, %c0_18] : memref<128x128xf32, #tpu.memory_space<vmem>>, vector<128x128xf32>
      tpu.vector_store %arg7[%c0_17, %c0_18], %23 {strides = array<i32>} : memref<128x128xf32, #tpu.memory_space<vmem>>, vector<128x128xf32>,
    } else {
    }
    return
  }
  func.func @transform_0(%arg0: i32, %arg1: i32) -> (i32, i32) {
    %c0_i32 = arith.constant 0 : i32
    return %arg1, %arg0 : i32, i32
  }
  func.func @transform_1(%arg0: i32, %arg1: i32) -> (i32, i32) {
    %c0_i32 = arith.constant 0 : i32
    %c0_i32_0 = arith.constant 0 : i32
    return %arg1, %c0_i32 : i32, i32
  }
  func.func @transform_2(%arg0: i32, %arg1: i32) -> (i32, i32) {
    %c0_i32 = arith.constant 0 : i32
    %c0_i32_0 = arith.constant 0 : i32
    return %arg1, %c0_i32 : i32, i32
  }
  func.func @transform_3(%arg0: i32, %arg1: i32) -> (i32, i32) {
    %c0_i32 = arith.constant 0 : i32
    %c0_i32_0 = arith.constant 0 : i32
    return %arg0, %c0_i32 : i32, i32
  }
  func.func @transform_4(%arg0: i32, %arg1: i32) -> i32 {
    %c0_i32 = arith.constant 0 : i32
    %c0_i32_0 = arith.constant 0 : i32
    return %c0_i32 : i32
  }
  func.func @transform_5(%arg0: i32, %arg1: i32) -> (i32, i32) {
    %c0_i32 = arith.constant 0 : i32
    %c0_i32_0 = arith.constant 0 : i32
    return %arg0, %c0_i32 : i32, i32
  }
}

</mosaic_0001>

<bundles_post_ra>
// kernel: agnn_conv.2
= control target key start
LH: loop header
LB: loop body
LE: loop exit
PB: predicated region body
PF: predicated region fallthrough
CT: control target
= control target key end

     0   :  { %s1593_s12 = smov 0   ;;  %s1595_s13 = smov 0   ;;  %s2349_s0 = inlined_call_operand.vmem [shape: f32[256,256], index: 0, kind: input, shape index: {}]   ;;  %s2350_s1 = inlined_call_operand.vmem [shape: f32[256,128], index: 1, kind: input, shape index: {}]   ;;  %s2351_s2 = inlined_call_operand.vmem [shape: f32[256,128], index: 2, kind: output, shape index: {0}]   ;;  %s2352_s3 = inlined_call_operand.vmem [shape: f32[256,1], index: 3, kind: output, shape index: {1}]  }
   0x1   :  { %s1597_s14 = smov 0   ;;  %s1599_s15 = smov 0  }
   0x2   :  { %s1601_s16 = smov 0   ;;  %s1603_s17 = smov 0  }
   0x3   :  { %s1605_s18 = smov 0  }
   0x4 LB: > { %s23_s19 = sadd.s32 1, %s1559_s16  ;;  %s26_s20 = sadd.s32 1, %s1563_s17  ;;  %s1567_s18 = sphi %s1605_s18, %s14_s18   ;;  %s1563_s17 = sphi %s1603_s17, %s2372_s17   ;;  %s1559_s16 = sphi %s1601_s16, %s2371_s16   ;;  %s1555_s15 = sphi %s1599_s15, %s2370_s15   ;;  %s1551_s14 = sphi %s1597_s14, %s2369_s14   ;;  %s1547_s13 = sphi %s1595_s13, %s2368_s13   ;;  %s1543_s12 = sphi %s1593_s12, %s2367_s12  }
   0x5   : > { %p24_p0 = scmp.ge.s32.totalorder %s23_s19, 2  ;;  %p42_p1 = scmp.ne.s32.totalorder %s1547_s13, %s1543_s12 }
   0x6   : > { %p43_p2 = scmp.eq.s32.totalorder %s1567_s18, 0  ;;  %s35_s24 = sadd.s32 1, %s1547_s13 }
   0x7   : > { %s2374_s19 = smov (%p24_p0, %s23_s19), 0  ;;  %s2376_s20 = smov (!%p24_p0, %s26_s20), %s1563_s17 }
   0x8   : > { %p44_p3 = por %p43_p2, %p42_p1  ;;  %p28_p4 = scmp.ge.s32.totalorder %s2376_s20, 2 }
   0x9   : > { %s31_s21 = ssub.s32 %s1559_s16, %s2374_s19  ;;  %p1271_p6 = scmp.ge.s32.totalorder %s1567_s18, 4 }
   0xa   : > { %s2378_s20 = smov (%p28_p4, %s2376_s20), 0 }
   0xb   : > { %s30_s22 = ssub.s32 %s1563_s17, %s2378_s20  ;;  %146 = sbr.rel (%p1271_p6) target bundleno = 32 (0x20), region = 16 }
   0xc   : > { %s32_s23 = sor.u32 %s31_s21, %s30_s22 }
   0xd   : > { %p33_p5 = scmp.eq.s32.totalorder %s32_s23, 0 }
   0xf   : > { %s1644_s25 = scalar_select %p33_p5, %s1547_s13, %s35_s24  }
  0x12   : > { %149 = sbr.rel (!%p44_p3) target bundleno = 32 (0x20), region = 20  ;;  %s151_s26 = sand.u32 (%p44_p3), 1, %s1547_s13  }
  0x13   : > { %s1288_s27 = sshll.u32 (%p44_p3), %s1563_s17, 5  ;;  %s1272_s28 = sshll.u32 (%p44_p3), %s151_s26, 7 }
  0x14   : > { %s156_s29 = sadd.s32 (%p44_p3), %s1559_s16, %s1288_s27  ;;  %s153_s7 = scalar_lea.vmem (%p44_p3), [#allocation4], %s1272_s28 }
  0x15   : > { %s1275_s30 = sshll.u32 (%p44_p3), %s156_s29, 3 }
  0x16   : > { %s1653_s6 = scalar_lea.vmem (%p44_p3), %s2349_s0, %s1275_s30 }
  0x17   : > { %v216_v0 = vld [vmem:[%s1653_s6] sm:$0xff] (%p44_p3)  ;;  %v218_v1 = vld [vmem:[%s1653_s6 + $0x10] sm:$0xff] (%p44_p3) }
  0x18   : > { %v220_v2 = vld [vmem:[%s1653_s6 + $0x20] sm:$0xff] (%p44_p3)  ;;  %217 = vst [vmem:[%s153_s7] sm:$0xff] (%p44_p3), %v216_v0  ;;  %219 = vst [vmem:[%s153_s7 + $0x8] sm:$0xff] (%p44_p3), %v218_v1  ;;  %v222_v3 = vld [vmem:[%s1653_s6 + $0x30] sm:$0xff] (%p44_p3) }
  0x19   : > { %221 = vst [vmem:[%s153_s7 + $0x10] sm:$0xff] %v220_v2  ;;  %v224_v4 = vld [vmem:[%s1653_s6 + $0x40] sm:$0xff]  ;;  %v226_v5 = vld [vmem:[%s1653_s6 + $0x50] sm:$0xff]  ;;  %223 = vst [vmem:[%s153_s7 + $0x18] sm:$0xff] %v222_v3 }
  0x1a   : > { %225 = vst [vmem:[%s153_s7 + $0x20] sm:$0xff] %v224_v4  ;;  %227 = vst [vmem:[%s153_s7 + $0x28] sm:$0xff] %v226_v5  ;;  %v228_v6 = vld [vmem:[%s1653_s6 + $0x60] sm:$0xff]  ;;  %v230_v7 = vld [vmem:[%s1653_s6 + $0x70] sm:$0xff] }
  0x1b   : > { %v232_v8 = vld [vmem:[%s1653_s6 + $0x80] sm:$0xff]  ;;  %229 = vst [vmem:[%s153_s7 + $0x30] sm:$0xff] %v228_v6  ;;  %231 = vst [vmem:[%s153_s7 + $0x38] sm:$0xff] %v230_v7  ;;  %v234_v9 = vld [vmem:[%s1653_s6 + $0x90] sm:$0xff] }
  0x1c   : > { %233 = vst [vmem:[%s153_s7 + $0x40] sm:$0xff] %v232_v8  ;;  %v236_v10 = vld [vmem:[%s1653_s6 + $0xa0] sm:$0xff]  ;;  %v238_v11 = vld [vmem:[%s1653_s6 + $0xb0] sm:$0xff]  ;;  %235 = vst [vmem:[%s153_s7 + $0x48] sm:$0xff] %v234_v9 }
  0x1d   : > { %237 = vst [vmem:[%s153_s7 + $0x50] sm:$0xff] %v236_v10  ;;  %239 = vst [vmem:[%s153_s7 + $0x58] sm:$0xff] %v238_v11  ;;  %v240_v12 = vld [vmem:[%s1653_s6 + $0xc0] sm:$0xff]  ;;  %v242_v13 = vld [vmem:[%s1653_s6 + $0xd0] sm:$0xff] }
  0x1e   : > { %v244_v14 = vld [vmem:[%s1653_s6 + $0xe0] sm:$0xff]  ;;  %241 = vst [vmem:[%s153_s7 + $0x60] sm:$0xff] %v240_v12  ;;  %243 = vst [vmem:[%s153_s7 + $0x68] sm:$0xff] %v242_v13  ;;  %v246_v15 = vld [vmem:[%s1653_s6 + $0xf0] sm:$0xff] }
  0x1f   : > { %245 = vst [vmem:[%s153_s7 + $0x70] sm:$0xff] %v244_v14  ;;  %247 = vst [vmem:[%s153_s7 + $0x78] sm:$0xff] %v246_v15 }
  0x20 PF: > { %p1276_p7 = scmp.ge.s32.totalorder %s1567_s18, 1  ;;  %p261_p8 = scmp.lt.s32.totalorder %s1567_s18, 5 }
  0x22   : > { %p262_p9 = pnand %p1276_p7, %p261_p8 }
  0x23   : > { %s268_s8 = sand.u32 (!%p262_p9), 1, %s1543_s12   ;;  %s1278_s9 = sshll.u32 (!%p262_p9), %s1555_s15, 4 }
  0x24   : > { %265 = sbr.rel (%p262_p9) target bundleno = 730 (0x2da), region = 62  ;;  %s1277_s10 = sshll.u32 (!%p262_p9), %s268_s8, 7 }
  0x25   : > { %p303_p10 = scmp.lt.s32.totalorder (!%p262_p9), %s1278_s9, 31  ;;  %s1690_s12 = scalar_lea.vmem (!%p262_p9), [#allocation4], %s1277_s10 }
  0x26   : > { %p1284_p11 = scmp.ne.s32.totalorder (!%p262_p9), %s1551_s14, 0 }
  0x2b   : > { %s2380_s9 = smov (!%p303_p10, %s1278_s9), 31  ;;  %323 = sbr.rel (%p1284_p11) target bundleno = 61 (0x3d), region = 70 }
  0x2c   : > { %s1279_s11 = sshll.u32 %s2380_s9, 3  ;;  %vm324_vm0 = vcmask (!%p1284_p11), 7168   ;;  %v1569_v16 = vmov (!%p1284_p11), -1e+29   ;;  %v1570_v17 = vmov (!%p1284_p11), 0.0  }
  0x2d   : > { %s1678_s23 = scalar_lea.vmem %s2350_s1, %s1279_s11  ;;  %s1683_s27 = scalar_lea.vmem %s2351_s2, %s1279_s11  ;;  %325 = vst.msk [vmem:[#allocation2] sm:$0xff] (!%p1284_p11), %vm324_vm0, %v1569_v16  ;;  %326 = vst.msk [vmem:[#allocation2 + $0x8] sm:$0xff] (!%p1284_p11), %vm324_vm0, %v1569_v16 }
  0x2e   : > { %s1688_s30 = scalar_lea.vmem %s2352_s3, %s1279_s11  ;;  %327 = vst.msk [vmem:[#allocation2 + $0x10] sm:$0xff] (!%p1284_p11), %vm324_vm0, %v1569_v16  ;;  %328 = vst.msk [vmem:[#allocation2 + $0x18] sm:$0xff] (!%p1284_p11), %vm324_vm0, %v1569_v16 }
  0x2f   : > { %329 = vst.msk [vmem:[#allocation2 + $0x20] sm:$0xff] (!%p1284_p11), %vm324_vm0, %v1569_v16  ;;  %330 = vst.msk [vmem:[#allocation2 + $0x28] sm:$0xff] (!%p1284_p11), %vm324_vm0, %v1569_v16 }
  0x30   : > { %331 = vst.msk [vmem:[#allocation2 + $0x30] sm:$0xff] (!%p1284_p11), %vm324_vm0, %v1569_v16  ;;  %332 = vst.msk [vmem:[#allocation2 + $0x38] sm:$0xff] (!%p1284_p11), %vm324_vm0, %v1569_v16 }
  0x31   : > { %333 = vst.msk [vmem:[#allocation2 + $0x40] sm:$0xff] (!%p1284_p11), %vm324_vm0, %v1569_v16  ;;  %334 = vst.msk [vmem:[#allocation2 + $0x48] sm:$0xff] (!%p1284_p11), %vm324_vm0, %v1569_v16 }
  0x32   : > { %335 = vst.msk [vmem:[#allocation2 + $0x50] sm:$0xff] %vm324_vm0, %v1569_v16  ;;  %336 = vst.msk [vmem:[#allocation2 + $0x58] sm:$0xff] %vm324_vm0, %v1569_v16 }
  0x33   : > { %337 = vst.msk [vmem:[#allocation2 + $0x60] sm:$0xff] %vm324_vm0, %v1569_v16  ;;  %338 = vst.msk [vmem:[#allocation2 + $0x68] sm:$0xff] %vm324_vm0, %v1569_v16 }
  0x34   : > { %339 = vst.msk [vmem:[#allocation2 + $0x70] sm:$0xff] %vm324_vm0, %v1569_v16  ;;  %340 = vst.msk [vmem:[#allocation2 + $0x78] sm:$0xff] %vm324_vm0, %v1569_v16 }
  0x35   : > { %341 = vst.msk [vmem:[#allocation3] sm:$0xff] %vm324_vm0, %v1570_v17  ;;  %342 = vst.msk [vmem:[#allocation3 + $0x8] sm:$0xff] %vm324_vm0, %v1570_v17 }
  0x36   : > { %343 = vst.msk [vmem:[#allocation3 + $0x10] sm:$0xff] %vm324_vm0, %v1570_v17  ;;  %344 = vst.msk [vmem:[#allocation3 + $0x18] sm:$0xff] %vm324_vm0, %v1570_v17 }
  0x37   : > { %345 = vst.msk [vmem:[#allocation3 + $0x20] sm:$0xff] %vm324_vm0, %v1570_v17  ;;  %346 = vst.msk [vmem:[#allocation3 + $0x28] sm:$0xff] %vm324_vm0, %v1570_v17 }
  0x38   : > { %347 = vst.msk [vmem:[#allocation3 + $0x30] sm:$0xff] %vm324_vm0, %v1570_v17  ;;  %348 = vst.msk [vmem:[#allocation3 + $0x38] sm:$0xff] %vm324_vm0, %v1570_v17 }
  0x39   : > { %349 = vst.msk [vmem:[#allocation3 + $0x40] sm:$0xff] %vm324_vm0, %v1570_v17  ;;  %350 = vst.msk [vmem:[#allocation3 + $0x48] sm:$0xff] %vm324_vm0, %v1570_v17 }
  0x3a   : > { %351 = vst.msk [vmem:[#allocation3 + $0x50] sm:$0xff] %vm324_vm0, %v1570_v17  ;;  %352 = vst.msk [vmem:[#allocation3 + $0x58] sm:$0xff] %vm324_vm0, %v1570_v17 }
  0x3b   : > { %353 = vst.msk [vmem:[#allocation3 + $0x60] sm:$0xff] %vm324_vm0, %v1570_v17  ;;  %354 = vst.msk [vmem:[#allocation3 + $0x68] sm:$0xff] %vm324_vm0, %v1570_v17 }
  0x3c   : > { %355 = vst.msk [vmem:[#allocation3 + $0x70] sm:$0xff] %vm324_vm0, %v1570_v17  ;;  %356 = vst.msk [vmem:[#allocation3 + $0x78] sm:$0xff] %vm324_vm0, %v1570_v17 }
  0x3d PF: > { %v1726_v18 = vld [vmem:[%s1690_s12 + $0x10] sm:$0xff]  ;;  %v1729_v19 = vld [vmem:[%s1690_s12] sm:$0xff]  ;;  %v1734_v20 = vld [vmem:[%s1690_s12 + $0x18] sm:$0xff]  ;;  %v1571_v30 = vmov 0   ;;  %vm693_vm1 = vcmask 7168   ;;  %p1285_p12 = scmp.ne.s32.totalorder %s1551_s14, 1 }
  0x3e   : > { %377 = vmax.xlane.f32.xlu1 %v1726_v18  ;;  %373 = vmax.xlane.f32.xlu0 %v1729_v19  ;;  %v1737_v21 = vld [vmem:[%s1690_s12 + $0x8] sm:$0xff]  ;;  %v1745_v23 = vld [vmem:[%s1690_s12 + $0x20] sm:$0xff]  ;;  %v1750_v24 = vld [vmem:[%s1690_s12 + $0x38] sm:$0xff] }
  0x3f   : > { %v1742_v22 = vld [vmem:[%s1690_s12 + $0x28] sm:$0xff]  ;;  %v1753_v25 = vld [vmem:[%s1690_s12 + $0x30] sm:$0xff]  ;;  %v1761_v27 = vld [vmem:[%s1690_s12 + $0x40] sm:$0xff]  ;;  %1349 = vset.pattern.permute.xlu0 %v1571_v30  ;;  %1350 = vset.pattern.permute.xlu1 %v1571_v30 }
  0x40   : > { %v1758_v26 = vld [vmem:[%s1690_s12 + $0x48] sm:$0xff]  ;;  %v1766_v28 = vld [vmem:[%s1690_s12 + $0x58] sm:$0xff]  ;;  %v1769_v29 = vld [vmem:[%s1690_s12 + $0x50] sm:$0xff] }
  0x41   : > { %v1774_v31 = vld [vmem:[%s1690_s12 + $0x68] sm:$0xff]  ;;  %v1777_v32 = vld [vmem:[%s1690_s12 + $0x60] sm:$0xff]  ;;  %v1782_v33 = vld [vmem:[%s1690_s12 + $0x78] sm:$0xff] }
  0x42   : > { %379 = vmax.xlane.f32.xlu1 %v1734_v20  ;;  %375 = vmax.xlane.f32.xlu0 %v1737_v21  ;;  %v1785_v34 = vld [vmem:[%s1690_s12 + $0x70] sm:$0xff]  ;;  %v1791_v36 = vld [vmem:[#allocation2] sm:$0xff]  ;;  %v1799_v41 = vld [vmem:[#allocation2 + $0x18] sm:$0xff] }
  0x43   : > { %v1789_v35 = vld [vmem:[#allocation2 + $0x10] sm:$0xff]  ;;  %v1801_v42 = vld [vmem:[#allocation2 + $0x8] sm:$0xff]  ;;  %v1820_v50 = vld [vmem:[#allocation2 + $0x20] sm:$0xff] }
  0x44   : > { %v1818_v49 = vld [vmem:[#allocation2 + $0x28] sm:$0xff]  ;;  %v1837_v57 = vld [vmem:[#allocation2 + $0x38] sm:$0xff]  ;;  %v1839_v58 = vld [vmem:[#allocation2 + $0x30] sm:$0xff] }
  0x45   : > { %v1856_v1 = vld [vmem:[#allocation2 + $0x48] sm:$0xff]  ;;  %v1858_v2 = vld [vmem:[#allocation2 + $0x40] sm:$0xff]  ;;  %v1875_v9 = vld [vmem:[#allocation2 + $0x58] sm:$0xff] }
  0x46   : > { %383 = vmax.xlane.f32.xlu1 %v1742_v22  ;;  %381 = vmax.xlane.f32.xlu0 %v1745_v23  ;;  %v1877_v10 = vld [vmem:[#allocation2 + $0x50] sm:$0xff]  ;;  %v1895_v17 = vld [vmem:[#allocation2 + $0x68] sm:$0xff]  ;;  %v1897_v30 = vld [vmem:[#allocation2 + $0x60] sm:$0xff] }
  0x4a   : > { %387 = vmax.xlane.f32.xlu1 %v1750_v24  ;;  %385 = vmax.xlane.f32.xlu0 %v1753_v25 }
  0x4e   : > { %391 = vmax.xlane.f32.xlu1 %v1758_v26  ;;  %389 = vmax.xlane.f32.xlu0 %v1761_v27 }
  0x52   : > { %395 = vmax.xlane.f32.xlu1 %v1766_v28  ;;  %393 = vmax.xlane.f32.xlu0 %v1769_v29 }
  0x56   : > { %399 = vmax.xlane.f32.xlu1 %v1774_v31  ;;  %397 = vmax.xlane.f32.xlu0 %v1777_v32 }
  0x5a   : > { %403 = vmax.xlane.f32.xlu1 %v1782_v33  ;;  %401 = vmax.xlane.f32.xlu0 %v1785_v34 }
  0xcb   : > { %v378_v37 = vpop.xlane.xlu1 %377  ;;  %v374_v38 = vpop.xlane.xlu0 %373 }
  0xcc   : > { %v1794_v39 = vmax.f32 %v1789_v35, %v378_v37  ;;  %v1797_v40 = vmax.f32 %v1791_v36, %v374_v38 }
  0xce   : > { %712 = vst.msk [vmem:[#allocation2 + $0x10] sm:$0xff] %vm693_vm1, %v1794_v39  ;;  %v437_v44 = vsub.f32 %v1791_v36, %v1797_v40  ;;  %710 = vst.msk [vmem:[#allocation2] sm:$0xff] %vm693_vm1, %v1797_v40  ;;  %487 = vperm.xlu0 %1349, %v1797_v40  }
  0xcf   : > { %v380_v45 = vpop.xlane.xlu1 %379  ;;  %v376_v46 = vpop.xlane.xlu0 %375 }
  0xd0   : > { %v1813_v47 = vmax.f32 %v1799_v41, %v380_v45  ;;  %v1816_v48 = vmax.f32 %v1801_v42, %v376_v46 }
  0xd2   : > { %713 = vst.msk [vmem:[#allocation2 + $0x18] sm:$0xff] %vm693_vm1, %v1813_v47  ;;  %v438_v52 = vsub.f32 %v1801_v42, %v1816_v48  ;;  %711 = vst.msk [vmem:[#allocation2 + $0x8] sm:$0xff] %vm693_vm1, %v1816_v48  ;;  %492 = vperm.xlu1 %1350, %v1816_v48  }
  0xd3   : > { %v384_v53 = vpop.xlane.xlu1 %383  ;;  %v382_v54 = vpop.xlane.xlu0 %381 }
  0xd4   : > { %v1832_v55 = vmax.f32 %v1818_v49, %v384_v53  ;;  %v1835_v56 = vmax.f32 %v1820_v50, %v382_v54 }
  0xd6   : > { %715 = vst.msk [vmem:[#allocation2 + $0x28] sm:$0xff] %vm693_vm1, %v1832_v55  ;;  %497 = vperm.xlu1 %1350, %v1794_v39   ;;  %714 = vst.msk [vmem:[#allocation2 + $0x20] sm:$0xff] %vm693_vm1, %v1835_v56  ;;  %v2355_v36 = vsub.f32 %v1820_v50, %v1835_v56 }
  0xd7   : > { %v388_v61 = vpop.xlane.xlu1 %387  ;;  %v386_v62 = vpop.xlane.xlu0 %385 }
  0xd8   : > { %v1851_v63 = vmax.f32 %v1837_v57, %v388_v61  ;;  %v1854_v0 = vmax.f32 %v1839_v58, %v386_v62  ;;  %v1915_v61 = vld [vmem:[#allocation2 + $0x78] sm:$0xff]  ;;  %v1917_v62 = vld [vmem:[#allocation2 + $0x70] sm:$0xff]  ;;  %v461_v40 = vmul.f32 1.442695, %v2355_v36 }
  0xda   : > { %717 = vst.msk [vmem:[#allocation2 + $0x38] sm:$0xff] %vm693_vm1, %v1851_v63  ;;  %502 = vperm.xlu1 %1350, %v1813_v47   ;;  %716 = vst.msk [vmem:[#allocation2 + $0x30] sm:$0xff] %vm693_vm1, %v1854_v0  ;;  %v2357_v50 = vsub.f32 %v1839_v58, %v1854_v0 }
  0xdb   : > { %v392_v5 = vpop.xlane.xlu1 %391  ;;  %v390_v6 = vpop.xlane.xlu0 %389 }
  0xdc   : > { %v1870_v7 = vmax.f32 %v1856_v1, %v392_v5  ;;  %v1873_v8 = vmax.f32 %v1858_v2, %v390_v6 }
  0xde   : > { %719 = vst.msk [vmem:[#allocation2 + $0x48] sm:$0xff] %vm693_vm1, %v1870_v7  ;;  %532 = vperm.xlu0 %1349, %v1870_v7   ;;  %507 = vperm.xlu1 %1350, %v1835_v56   ;;  %718 = vst.msk [vmem:[#allocation2 + $0x40] sm:$0xff] %vm693_vm1, %v1873_v8  ;;  %v465_v56 = vmul.f32 1.442695, %v2357_v50  ;;  %v2359_v58 = vsub.f32 %v1856_v1, %v1870_v7 }
  0xdf   : > { %v396_v13 = vpop.xlane.xlu1 %395  ;;  %v394_v14 = vpop.xlane.xlu0 %393 }
  0xe0   : > { %v1890_v15 = vmax.f32 %v1875_v9, %v396_v13  ;;  %v1893_v16 = vmax.f32 %v1877_v10, %v394_v14 }
  0xe2   : > { %721 = vst.msk [vmem:[#allocation2 + $0x58] sm:$0xff] %vm693_vm1, %v1890_v15  ;;  %542 = vperm.xlu0 %1349, %v1890_v15   ;;  %512 = vperm.xlu1 %1350, %v1832_v55   ;;  %720 = vst.msk [vmem:[#allocation2 + $0x50] sm:$0xff] %vm693_vm1, %v1893_v16  ;;  %v2362_v1 = vsub.f32 %v1877_v10, %v1893_v16 }
  0xe3   : > { %v400_v45 = vpop.xlane.xlu1 %399  ;;  %v398_v46 = vpop.xlane.xlu0 %397 }
  0xe4   : > { %v1910_v53 = vmax.f32 %v1895_v17, %v400_v45  ;;  %v1913_v54 = vmax.f32 %v1897_v30, %v398_v46  ;;  %v473_v7 = vmul.f32 1.442695, %v2362_v1  ;;  %v2034_v1 = vld [vmem:[%s1678_s23] sm:$0xff] (!%p1285_p12) }
  0xe6   : > { %723 = vst.msk [vmem:[#allocation2 + $0x68] sm:$0xff] %vm693_vm1, %v1910_v53  ;;  %552 = vperm.xlu0 %1349, %v1910_v53   ;;  %517 = vperm.xlu1 %1350, %v1854_v0   ;;  %722 = vst.msk [vmem:[#allocation2 + $0x60] sm:$0xff] %vm693_vm1, %v1913_v54  ;;  %v471_v0 = vmul.f32 1.442695, %v2359_v58 }
  0xe7   : > { %v404_v13 = vpop.xlane.xlu1 %403  ;;  %v402_v14 = vpop.xlane.xlu0 %401 }
  0xe8   : > { %v1930_v45 = vmax.f32 %v1915_v61, %v404_v13  ;;  %v1933_v46 = vmax.f32 %v1917_v62, %v402_v14 }
  0xea   : > { %725 = vst.msk [vmem:[#allocation2 + $0x78] sm:$0xff] %vm693_vm1, %v1930_v45  ;;  %562 = vperm.xlu0 %1349, %v1930_v45   ;;  %522 = vperm.xlu1 %1350, %v1851_v63   ;;  %724 = vst.msk [vmem:[#allocation2 + $0x70] sm:$0xff] %vm693_vm1, %v1933_v46 }
  0xee   : > { %527 = vperm.xlu1 %1350, %v1873_v8  }
  0xf2   : > { %537 = vperm.xlu1 %1350, %v1893_v16  }
  0xf6   : > { %547 = vperm.xlu1 %1350, %v1913_v54  }
  0xfa   : > { %557 = vperm.xlu1 %1350, %v1933_v46  }
 0x14d   : > { %v488_v13 = vpop.permute.xlu0 %487 }
 0x14e   : > { %v565_v14 = vsub.f32 %v1729_v19, %v488_v13 }
 0x150   : > { %v581_v5 = vmul.f32 1.442695, %v565_v14 }
 0x151   : > { %v493_v38 = vpop.permute.xlu1 %492 }
 0x152   : > { %1351 = vpow2.f32 %v581_v5  ;;  %v566_v37 = vsub.f32 %v1737_v21, %v493_v38 }
 0x154   : > { %v583_v6 = vmul.f32 1.442695, %v566_v37 }
 0x155   : > { %v498_v12 = vpop.permute.xlu1 %497 }
 0x156   : > { %1353 = vpow2.f32 %v583_v6  ;;  %v567_v11 = vsub.f32 %v1726_v18, %v498_v12 }
 0x158   : > { %v585_v3 = vmul.f32 1.442695, %v567_v11 }
 0x159   : > { %v503_v4 = vpop.permute.xlu1 %502 }
 0x15a   : > { %1355 = vpow2.f32 %v585_v3  ;;  %v568_v59 = vsub.f32 %v1734_v20, %v503_v4 }
 0x15c   : > { %v1352_v60 = vpop.eup %1351  ;;  %v587_v51 = vmul.f32 1.442695, %v568_v59 }
 0x15d   : > { %v508_v43 = vpop.permute.xlu1 %507  ;;  %645 = vadd.xlane.f32.xlu1 %v1352_v60  ;;  %v533_v21 = vpop.permute.xlu0 %532 }
 0x15e   : > { %1357 = vpow2.f32 %v587_v51  ;;  %v569_v19 = vsub.f32 %v1745_v23, %v508_v43  ;;  %v574_v23 = vsub.f32 %v1758_v26, %v533_v21 }
 0x160   : > { %v1354_v5 = vpop.eup %1353  ;;  %v589_v13 = vmul.f32 1.442695, %v569_v19  ;;  %v599_v14 = vmul.f32 1.442695, %v574_v23 }
 0x161   : > { %647 = vadd.xlane.f32.xlu0 %v1354_v5  ;;  %v513_v37 = vpop.permute.xlu1 %512  ;;  %v543_v20 = vpop.permute.xlu0 %542 }
 0x162   : > { %1359 = vpow2.f32 %v589_v13  ;;  %v570_v18 = vsub.f32 %v1742_v22, %v513_v37  ;;  %v576_v19 = vsub.f32 %v1766_v28, %v543_v20 }
 0x164   : > { %v1356_v11 = vpop.eup %1355  ;;  %v591_v12 = vmul.f32 1.442695, %v570_v18  ;;  %v603_v26 = vmul.f32 1.442695, %v576_v19 }
 0x165   : > { %649 = vadd.xlane.f32.xlu0 %v1356_v11  ;;  %v518_v3 = vpop.permute.xlu1 %517  ;;  %v553_v6 = vpop.permute.xlu0 %552 }
 0x166   : > { %1361 = vpow2.f32 %v591_v12  ;;  %v571_v59 = vsub.f32 %v1753_v25, %v518_v3  ;;  %v578_v21 = vsub.f32 %v1774_v31, %v553_v6 }
 0x168   : > { %v1358_v60 = vpop.eup %1357  ;;  %v593_v51 = vmul.f32 1.442695, %v571_v59  ;;  %v607_v28 = vmul.f32 1.442695, %v578_v21 }
 0x169   : > { %v523_v43 = vpop.permute.xlu1 %522  ;;  %651 = vadd.xlane.f32.xlu1 %v1358_v60 }
 0x16a   : > { %1363 = vpow2.f32 %v593_v51  ;;  %v572_v4 = vsub.f32 %v1750_v24, %v523_v43  ;;  %v563_v24 = vpop.permute.xlu0 %562 }
 0x16b   : > { %v580_v20 = vsub.f32 %v1782_v33, %v563_v24 }
 0x16c   : > { %v1360_v38 = vpop.eup %1359  ;;  %v595_v22 = vmul.f32 1.442695, %v572_v4 }
 0x16d   : > { %653 = vadd.xlane.f32.xlu0 %v1360_v38  ;;  %v528_v5 = vpop.permute.xlu1 %527  ;;  %v611_v31 = vmul.f32 1.442695, %v580_v20 }
 0x16e   : > { %1365 = vpow2.f32 %v595_v22  ;;  %v573_v25 = vsub.f32 %v1761_v27, %v528_v5  ;;  %v455_v5 = vmul.f32 1.442695, %v438_v52  ;;  %v614_v52 = vld [vmem:[#allocation3 + $0x8] sm:$0xff] }
 0x16f   : > { %1367 = vpow2.f32 %v599_v14 }
 0x170   : > { %v1362_v13 = vpop.eup %1361  ;;  %v597_v37 = vmul.f32 1.442695, %v573_v25  ;;  %v2353_v25 = vsub.f32 %v1789_v35, %v1794_v39  ;;  %v2356_v35 = vsub.f32 %v1818_v49, %v1832_v55  ;;  %v616_v49 = vld [vmem:[#allocation3 + $0x18] sm:$0xff] }
 0x171   : > { %v538_v18 = vpop.permute.xlu1 %537  ;;  %655 = vadd.xlane.f32.xlu1 %v1362_v13 }
 0x172   : > { %1369 = vpow2.f32 %v597_v37  ;;  %v575_v11 = vsub.f32 %v1769_v29, %v538_v18  ;;  %v457_v13 = vmul.f32 1.442695, %v2353_v25  ;;  %v2354_v37 = vsub.f32 %v1799_v41, %v1813_v47  ;;  %v613_v18 = vld [vmem:[#allocation3] sm:$0xff] }
 0x173   : > { %1371 = vpow2.f32 %v603_v26  ;;  %v463_v39 = vmul.f32 1.442695, %v2356_v35 }
 0x174   : > { %v1364_v12 = vpop.eup %1363  ;;  %v601_v3 = vmul.f32 1.442695, %v575_v11  ;;  %v459_v26 = vmul.f32 1.442695, %v2354_v37 }
 0x175   : > { %657 = vadd.xlane.f32.xlu0 %v1364_v12  ;;  %v548_v27 = vpop.permute.xlu1 %547  ;;  %v615_v12 = vld [vmem:[#allocation3 + $0x10] sm:$0xff] }
 0x176   : > { %1373 = vpow2.f32 %v601_v3  ;;  %v577_v59 = vsub.f32 %v1777_v32, %v548_v27 }
 0x177   : > { %1375 = vpow2.f32 %v607_v28 }
 0x178   : > { %v1366_v60 = vpop.eup %1365  ;;  %v605_v51 = vmul.f32 1.442695, %v577_v59  ;;  %v2358_v59 = vsub.f32 %v1837_v57, %v1851_v63 }
 0x179   : > { %v558_v23 = vpop.permute.xlu1 %557  ;;  %659 = vadd.xlane.f32.xlu1 %v1366_v60  ;;  %v1368_v43 = vpop.eup %1367 }
 0x17a   : > { %1377 = vpow2.f32 %v605_v51  ;;  %v579_v29 = vsub.f32 %v1785_v34, %v558_v23  ;;  %v453_v34 = vmul.f32 1.442695, %v437_v44  ;;  %v467_v60 = vmul.f32 1.442695, %v2358_v59 }
 0x17b   : > { %1379 = vpow2.f32 %v611_v31 }
 0x17c   : > { %v1370_v4 = vpop.eup %1369  ;;  %v609_v38 = vmul.f32 1.442695, %v579_v29  ;;  %v617_v29 = vld [vmem:[#allocation3 + $0x20] sm:$0xff] }
 0x17d   : > { %661 = vadd.xlane.f32.xlu0 %v1370_v4  ;;  %663 = vadd.xlane.f32.xlu1 %v1368_v43  ;;  %v1372_v33 = vpop.eup %1371  ;;  %v2360_v4 = vsub.f32 %v1858_v2, %v1873_v8 }
 0x17e   : > { %1381 = vpow2.f32 %v609_v38 }
 0x17f   : > { %1383 = vpow2.f32 %v453_v34  ;;  %v469_v38 = vmul.f32 1.442695, %v2360_v4  ;;  %v619_v34 = vld [vmem:[#allocation3 + $0x30] sm:$0xff] }
 0x180   : > { %v1374_v6 = vpop.eup %1373  ;;  %1385 = vpow2.f32 %v455_v5  ;;  %v2363_v5 = vsub.f32 %v1895_v17, %v1910_v53  ;;  %v2366_v17 = vsub.f32 %v1917_v62, %v1933_v46  ;;  %v624_v46 = vld [vmem:[#allocation3 + $0x58] sm:$0xff] }
 0x181   : > { %665 = vadd.xlane.f32.xlu0 %v1374_v6  ;;  %667 = vadd.xlane.f32.xlu1 %v1372_v33  ;;  %v1376_v32 = vpop.eup %1375  ;;  %1387 = vpow2.f32 %v457_v13  ;;  %v618_v6 = vld [vmem:[#allocation3 + $0x28] sm:$0xff] }
 0x182   : > { %1389 = vpow2.f32 %v459_v26  ;;  %v479_v25 = vmul.f32 1.442695, %v2363_v5  ;;  %v620_v26 = vld [vmem:[#allocation3 + $0x38] sm:$0xff]  ;;  %v481_v53 = vmul.f32 1.442695, %v2366_v17 }
 0x183   : > { %1391 = vpow2.f32 %v461_v40 }
 0x184   : > { %v1378_v22 = vpop.eup %1377  ;;  %1393 = vpow2.f32 %v463_v39 }
 0x185   : > { %669 = vadd.xlane.f32.xlu0 %v1378_v22  ;;  %671 = vadd.xlane.f32.xlu1 %v1376_v32  ;;  %v1380_v14 = vpop.eup %1379  ;;  %1395 = vpow2.f32 %v465_v56  ;;  %v2361_v32 = vsub.f32 %v1875_v9, %v1890_v15  ;;  %v2364_v9 = vsub.f32 %v1897_v30, %v1913_v54 }
 0x186   : > { %1397 = vpow2.f32 %v467_v60 }
 0x187   : > { %1399 = vpow2.f32 %v471_v0  ;;  %v475_v22 = vmul.f32 1.442695, %v2361_v32  ;;  %v477_v15 = vmul.f32 1.442695, %v2364_v9  ;;  %v628_v0 = vld [vmem:[#allocation3 + $0x78] sm:$0xff]  ;;  %v2054_v9 = vld [vmem:[%s1678_s23 + $0x20] sm:$0xff] (!%p1285_p12) }
 0x188   : > { %v1382_v19 = vpop.eup %1381  ;;  %1401 = vpow2.f32 %v469_v38 }
 0x189   : > { %673 = vadd.xlane.f32.xlu0 %v1382_v19  ;;  %675 = vadd.xlane.f32.xlu1 %v1380_v14  ;;  %v1384_v21 = vpop.eup %1383  ;;  %1403 = vpow2.f32 %v475_v22 }
 0x18a   : > { %v629_v44 = vmul.f32 %v1384_v21, %v613_v18  ;;  %v1386_v42 = vpop.eup %1385  ;;  %1405 = vpow2.f32 %v473_v7  ;;  %v2365_v21 = vsub.f32 %v1915_v61, %v1930_v45  ;;  %v2037_v7 = vld [vmem:[%s1678_s23 + $0x18] sm:$0xff] (!%p1285_p12) }
 0x18b   : > { %v630_v41 = vmul.f32 %v1386_v42, %v614_v52  ;;  %v1388_v47 = vpop.eup %1387  ;;  %1407 = vpow2.f32 %v479_v25  ;;  %v622_v42 = vld [vmem:[#allocation3 + $0x48] sm:$0xff]  ;;  %v749_v5 = vmul.f32 (!%p1285_p12), %v2037_v7, %v2037_v7 }
 0x18c   : > { %v631_v28 = vmul.f32 %v1388_v47, %v615_v12  ;;  %v1390_v20 = vpop.eup %1389  ;;  %v483_v18 = vmul.f32 1.442695, %v2365_v21  ;;  %1409 = vpow2.f32 %v477_v15 }
 0x18d   : > { %v632_v51 = vmul.f32 %v1390_v20, %v616_v49  ;;  %v1392_v31 = vpop.eup %1391  ;;  %v625_v49 = vld [vmem:[#allocation3 + $0x60] sm:$0xff] }
 0x18e   : > { %v633_v57 = vmul.f32 %v1392_v31, %v617_v29  ;;  %v1394_v63 = vpop.eup %1393  ;;  %1411 = vpow2.f32 %v483_v18  ;;  %v2071_v18 = vld [vmem:[%s1678_s23 + $0x48] sm:$0xff] (!%p1285_p12) }
 0x18f   : > { %v634_v2 = vmul.f32 %v1394_v63, %v618_v6  ;;  %v1396_v8 = vpop.eup %1395  ;;  %1413 = vpow2.f32 %v481_v53  ;;  %v755_v17 = vmul.f32 (!%p1285_p12), %v2071_v18, %v2071_v18 }
 0x190   : > { %v635_v10 = vmul.f32 %v1396_v8, %v619_v34  ;;  %v1398_v16 = vpop.eup %1397  ;;  %v746_v8 = vmul.f32 (!%p1285_p12), %v2034_v1, %v2034_v1  ;;  %v1572_v34 = vmov (!%p1285_p12), 0  }
 0x191   : > { %v1400_v40 = vpop.eup %1399  ;;  %v636_v30 = vmul.f32 %v1398_v16, %v620_v26  ;;  %1416 = vset.pattern.permute.xlu1 (!%p1285_p12), %v1572_v34  ;;  %1415 = vset.pattern.permute.xlu0 (!%p1285_p12), %v1572_v34  ;;  %v2061_v16 = vld [vmem:[%s1678_s23 + $0x38] sm:$0xff] (!%p1285_p12) }
 0x192   : > { %v1402_v54 = vpop.eup %1401  ;;  %v638_v61 = vmul.f32 %v1400_v40, %v622_v42  ;;  %762 = vadd.xlane.f32.xlu0 (!%p1285_p12), %v746_v8  ;;  %v753_v26 = vmul.f32 (!%p1285_p12), %v2061_v16, %v2061_v16  ;;  %v2081_v40 = vld [vmem:[%s1678_s23 + $0x58] sm:$0xff] (!%p1285_p12)  ;;  %v2091_v42 = vld [vmem:[%s1678_s23 + $0x68] sm:$0xff] (!%p1285_p12) }
 0x1ea   : > { %v646_v48 = vpop.xlane.xlu1 %645 }
 0x1eb   : > { %v677_v24 = vadd.f32 %v646_v48, %v629_v44  ;;  %v621_v48 = vld [vmem:[#allocation3 + $0x40] sm:$0xff] }
 0x1ec   : > { %v637_v45 = vmul.f32 %v1402_v54, %v621_v48  ;;  %v757_v54 = vmul.f32 (!%p1285_p12), %v2081_v40, %v2081_v40  ;;  %v2094_v48 = vld [vmem:[%s1678_s23 + $0x60] sm:$0xff] (!%p1285_p12) }
 0x1ed   : > { %694 = vst.msk [vmem:[#allocation3] sm:$0xff] %vm693_vm1, %v677_v24  ;;  %v1404_v24 = vpop.eup %1403 }
 0x1ee   : > { %v648_v11 = vpop.xlane.xlu0 %647  ;;  %v1406_v35 = vpop.eup %1405 }
 0x1ef   : > { %v678_v3 = vadd.f32 %v648_v11, %v630_v41  ;;  %v623_v41 = vld [vmem:[#allocation3 + $0x50] sm:$0xff]  ;;  %v1408_v12 = vpop.eup %1407 }
 0x1f0   : > { %v639_v50 = vmul.f32 %v1406_v35, %v623_v41  ;;  %v1410_v56 = vpop.eup %1409 }
 0x1f1   : > { %695 = vst.msk [vmem:[#allocation3 + $0x8] sm:$0xff] %vm693_vm1, %v678_v3  ;;  %v640_v3 = vmul.f32 %v1404_v24, %v624_v46  ;;  %v1412_v60 = vpop.eup %1411  ;;  %v641_v31 = vmul.f32 %v1410_v56, %v625_v49  ;;  %v758_v24 = vmul.f32 (!%p1285_p12), %v2094_v48, %v2094_v48 }
 0x1f2   : > { %v650_v27 = vpop.xlane.xlu0 %649 }
 0x1f3   : > { %v679_v55 = vadd.f32 %v650_v27, %v631_v28  ;;  %v626_v27 = vld [vmem:[#allocation3 + $0x68] sm:$0xff] }
 0x1f5   : > { %696 = vst.msk [vmem:[#allocation3 + $0x10] sm:$0xff] %vm693_vm1, %v679_v55 }
 0x1f6   : > { %v652_v23 = vpop.xlane.xlu1 %651 }
 0x1f7   : > { %v680_v43 = vadd.f32 %v652_v23, %v632_v51  ;;  %v642_v51 = vmul.f32 %v1408_v12, %v626_v27  ;;  %v1414_v23 = vpop.eup %1413 }
 0x1f9   : > { %697 = vst.msk [vmem:[#allocation3 + $0x18] sm:$0xff] %vm693_vm1, %v680_v43  ;;  %v627_v43 = vld [vmem:[#allocation3 + $0x70] sm:$0xff] }
 0x1fa   : > { %v654_v33 = vpop.xlane.xlu0 %653  ;;  %v643_v63 = vmul.f32 %v1414_v23, %v627_v43 }
 0x1fb   : > { %v681_v14 = vadd.f32 %v654_v33, %v633_v57  ;;  %v644_v57 = vmul.f32 %v1412_v60, %v628_v0 }
 0x1fc   : > { %v940_v41 = vld [vmem:[#allocation3 + $0x10] sm:$0xff] (!%p1285_p12) }
 0x1fd   : > { %698 = vst.msk [vmem:[#allocation3 + $0x20] sm:$0xff] %vm693_vm1, %v681_v14  ;;  %v2031_v14 = vld [vmem:[%s1678_s23 + $0x10] sm:$0xff] (!%p1285_p12) }
 0x1fe   : > { %v656_v19 = vpop.xlane.xlu1 %655 }
 0x1ff   : > { %v682_v13 = vadd.f32 %v656_v19, %v634_v2  ;;  %v748_v2 = vmul.f32 (!%p1285_p12), %v2031_v14, %v2031_v14  ;;  %v2044_v19 = vld [vmem:[%s1678_s23 + $0x8] sm:$0xff] (!%p1285_p12) }
 0x200   : > { %v747_v25 = vmul.f32 (!%p1285_p12), %v2044_v19, %v2044_v19 }
 0x201   : > { %699 = vst.msk [vmem:[#allocation3 + $0x28] sm:$0xff] %vm693_vm1, %v682_v13  ;;  %766 = vadd.xlane.f32.xlu1 (!%p1285_p12), %v748_v2  ;;  %v2051_v13 = vld [vmem:[%s1678_s23 + $0x28] sm:$0xff] (!%p1285_p12) }
 0x202   : > { %v658_v37 = vpop.xlane.xlu0 %657  ;;  %764 = vadd.xlane.f32.xlu0 (!%p1285_p12), %v747_v25  ;;  %v751_v15 = vmul.f32 (!%p1285_p12), %v2051_v13, %v2051_v13 }
 0x203   : > { %v683_v36 = vadd.f32 %v658_v37, %v635_v10  ;;  %v750_v10 = vmul.f32 (!%p1285_p12), %v2054_v9, %v2054_v9  ;;  %v2064_v37 = vld [vmem:[%s1678_s23 + $0x30] sm:$0xff] (!%p1285_p12) }
 0x204   : > { %v752_v21 = vmul.f32 (!%p1285_p12), %v2064_v37, %v2064_v37 }
 0x205   : > { %700 = vst.msk [vmem:[#allocation3 + $0x30] sm:$0xff] %vm693_vm1, %v683_v36  ;;  %768 = vadd.xlane.f32.xlu1 (!%p1285_p12), %v749_v5  ;;  %v2074_v36 = vld [vmem:[%s1678_s23 + $0x40] sm:$0xff] (!%p1285_p12) }
 0x206   : > { %v660_v44 = vpop.xlane.xlu1 %659  ;;  %770 = vadd.xlane.f32.xlu0 (!%p1285_p12), %v750_v10  ;;  %v754_v53 = vmul.f32 (!%p1285_p12), %v2074_v36, %v2074_v36 }
 0x207   : > { %v684_v52 = vadd.f32 %v660_v44, %v636_v30  ;;  %v2084_v30 = vld [vmem:[%s1678_s23 + $0x50] sm:$0xff] (!%p1285_p12) }
 0x208   : > { %v756_v44 = vmul.f32 (!%p1285_p12), %v2084_v30, %v2084_v30 }
 0x209   : > { %701 = vst.msk [vmem:[#allocation3 + $0x38] sm:$0xff] %vm693_vm1, %v684_v52  ;;  %772 = vadd.xlane.f32.xlu1 (!%p1285_p12), %v751_v15  ;;  %v759_v52 = vmul.f32 (!%p1285_p12), %v2091_v42, %v2091_v42 }
 0x20a   : > { %v664_v39 = vpop.xlane.xlu1 %663  ;;  %v662_v62 = vpop.xlane.xlu0 %661  ;;  %774 = vadd.xlane.f32.xlu0 (!%p1285_p12), %v752_v21 }
 0x20b   : > { %v686_v47 = vadd.f32 %v664_v39, %v638_v61  ;;  %v685_v11 = vadd.f32 %v662_v62, %v637_v45  ;;  %v2101_v61 = vld [vmem:[%s1678_s23 + $0x78] sm:$0xff] (!%p1285_p12)  ;;  %v2104_v45 = vld [vmem:[%s1678_s23 + $0x70] sm:$0xff] (!%p1285_p12)  ;;  %v939_v62 = vld [vmem:[#allocation3 + $0x8] sm:$0xff] (!%p1285_p12) }
 0x20c   : > { %v761_v35 = vmul.f32 (!%p1285_p12), %v2101_v61, %v2101_v61  ;;  %v760_v39 = vmul.f32 (!%p1285_p12), %v2104_v45, %v2104_v45  ;;  %v955_v46 = vmax.f32 (!%p1285_p12), %v939_v62, 1e-30  ;;  %v944_v23 = vld [vmem:[#allocation3 + $0x30] sm:$0xff] (!%p1285_p12)  ;;  %v1114_v62 = vld [vmem:[#allocation2] sm:$0xff] (!%p1285_p12) }
 0x20d   : > { %703 = vst.msk [vmem:[#allocation3 + $0x48] sm:$0xff] %vm693_vm1, %v686_v47  ;;  %702 = vst.msk [vmem:[#allocation3 + $0x40] sm:$0xff] %vm693_vm1, %v685_v11  ;;  %776 = vadd.xlane.f32.xlu1 (!%p1285_p12), %v753_v26  ;;  %v938_v47 = vld [vmem:[#allocation3] sm:$0xff] (!%p1285_p12)  ;;  %v956_v11 = vmax.f32 (!%p1285_p12), %v940_v41, 1e-30  ;;  %v1116_v41 = vld [vmem:[#allocation2 + $0x10] sm:$0xff] (!%p1285_p12) }
 0x20e   : > { %v668_v28 = vpop.xlane.xlu1 %667  ;;  %v666_v20 = vpop.xlane.xlu0 %665  ;;  %778 = vadd.xlane.f32.xlu0 (!%p1285_p12), %v754_v53  ;;  %1417 = vrcp.f32 (!%p1285_p12), %v955_v46  ;;  %v954_v12 = vmax.f32 (!%p1285_p12), %v938_v47, 1e-30  ;;  %v1115_v46 = vld [vmem:[#allocation2 + $0x8] sm:$0xff] (!%p1285_p12)  ;;  %v1117_v47 = vld [vmem:[#allocation2 + $0x18] sm:$0xff] (!%p1285_p12)  ;;  %1130 = vst.msk [vmem:[%s1688_s30] sm:$0xff] (!%p1285_p12), %vm693_vm1, %v1114_v62  ;;  %1132 = vst.msk [vmem:[%s1688_s30 + $0x10] sm:$0xff] (!%p1285_p12), %vm693_vm1, %v1116_v41 }
 0x20f   : > { %v688_v55 = vadd.f32 %v668_v28, %v640_v3  ;;  %v687_v59 = vadd.f32 %v666_v20, %v639_v50  ;;  %v941_v3 = vld [vmem:[#allocation3 + $0x18] sm:$0xff] (!%p1285_p12)  ;;  %1419 = vrcp.f32 (!%p1285_p12), %v956_v11  ;;  %v942_v28 = vld [vmem:[#allocation3 + $0x20] sm:$0xff] (!%p1285_p12)  ;;  %1131 = vst.msk [vmem:[%s1688_s30 + $0x8] sm:$0xff] (!%p1285_p12), %vm693_vm1, %v1115_v46  ;;  %1133 = vst.msk [vmem:[%s1688_s30 + $0x18] sm:$0xff] (!%p1285_p12), %vm693_vm1, %v1117_v47 }
 0x210   : > { %v957_v56 = vmax.f32 (!%p1285_p12), %v941_v3, 1e-30  ;;  %1421 = vrcp.f32 (!%p1285_p12), %v954_v12  ;;  %v958_v49 = vmax.f32 (!%p1285_p12), %v942_v28, 1e-30  ;;  %v1118_v11 = vld [vmem:[#allocation2 + $0x20] sm:$0xff] (!%p1285_p12)  ;;  %v1119_v12 = vld [vmem:[#allocation2 + $0x28] sm:$0xff] (!%p1285_p12) }
 0x211   : > { %705 = vst.msk [vmem:[#allocation3 + $0x58] sm:$0xff] %vm693_vm1, %v688_v55  ;;  %704 = vst.msk [vmem:[#allocation3 + $0x50] sm:$0xff] %vm693_vm1, %v687_v59  ;;  %780 = vadd.xlane.f32.xlu1 (!%p1285_p12), %v755_v17  ;;  %v943_v55 = vld [vmem:[#allocation3 + $0x28] sm:$0xff] (!%p1285_p12)  ;;  %v1120_v3 = vld [vmem:[#allocation2 + $0x30] sm:$0xff] (!%p1285_p12) }
 0x212   : > { %v672_v29 = vpop.xlane.xlu1 %671  ;;  %v670_v58 = vpop.xlane.xlu0 %669  ;;  %782 = vadd.xlane.f32.xlu0 (!%p1285_p12), %v756_v44  ;;  %1423 = vrcp.f32 (!%p1285_p12), %v957_v56  ;;  %v1122_v56 = vld [vmem:[#allocation2 + $0x40] sm:$0xff] (!%p1285_p12)  ;;  %1134 = vst.msk [vmem:[%s1688_s30 + $0x20] sm:$0xff] (!%p1285_p12), %vm693_vm1, %v1118_v11  ;;  %1135 = vst.msk [vmem:[%s1688_s30 + $0x28] sm:$0xff] (!%p1285_p12), %vm693_vm1, %v1119_v12  ;;  %v1123_v28 = vld [vmem:[#allocation2 + $0x48] sm:$0xff] (!%p1285_p12) }
 0x213   : > { %v690_v4 = vadd.f32 %v672_v29, %v642_v51  ;;  %v689_v38 = vadd.f32 %v670_v58, %v641_v31  ;;  %729 = sbr.rel (%p1285_p12) target bundleno = 730 (0x2da), region = 74  ;;  %v959_v31 = vmax.f32 (!%p1285_p12), %v943_v55, 1e-30  ;;  %1136 = vst.msk [vmem:[%s1688_s30 + $0x30] sm:$0xff] (!%p1285_p12), %vm693_vm1, %v1120_v3  ;;  %1138 = vst.msk [vmem:[%s1688_s30 + $0x40] sm:$0xff] (!%p1285_p12), %vm693_vm1, %v1122_v56  ;;  %v1127_v55 = vld [vmem:[#allocation2 + $0x68] sm:$0xff] (!%p1285_p12) }
 0x214   : > { %v947_v50 = vld [vmem:[#allocation3 + $0x48] sm:$0xff] (!%p1285_p12)  ;;  %1139 = vst.msk [vmem:[%s1688_s30 + $0x48] sm:$0xff] (!%p1285_p12), %vm693_vm1, %v1123_v28  ;;  %1143 = vst.msk [vmem:[%s1688_s30 + $0x68] sm:$0xff] (!%p1285_p12), %vm693_vm1, %v1127_v55 }
 0x215   : > { %707 = vst.msk [vmem:[#allocation3 + $0x68] sm:$0xff] %vm693_vm1, %v690_v4  ;;  %706 = vst.msk [vmem:[#allocation3 + $0x60] sm:$0xff] %vm693_vm1, %v689_v38  ;;  %784 = vadd.xlane.f32.xlu1 (!%p1285_p12), %v757_v54  ;;  %v963_v20 = vmax.f32 (!%p1285_p12), %v947_v50, 1e-30  ;;  %v960_v4 = vmax.f32 (!%p1285_p12), %v944_v23, 1e-30 }
 0x216   : > { %v676_v33 = vpop.xlane.xlu1 %675  ;;  %v674_v6 = vpop.xlane.xlu0 %673  ;;  %786 = vadd.xlane.f32.xlu0 (!%p1285_p12), %v758_v24  ;;  %v945_v38 = vld [vmem:[#allocation3 + $0x38] sm:$0xff] (!%p1285_p12) }
 0x217   : > { %v692_v32 = vadd.f32 %v676_v33, %v644_v57  ;;  %v691_v22 = vadd.f32 %v674_v6, %v643_v63  ;;  %1425 = vrcp.f32 (!%p1285_p12), %v963_v20  ;;  %v961_v6 = vmax.f32 (!%p1285_p12), %v945_v38, 1e-30  ;;  %v1121_v50 = vld [vmem:[#allocation2 + $0x38] sm:$0xff] (!%p1285_p12)  ;;  %v1124_v20 = vld [vmem:[#allocation2 + $0x50] sm:$0xff] (!%p1285_p12) }
 0x218   : > { %v949_v27 = vld [vmem:[#allocation3 + $0x58] sm:$0xff] (!%p1285_p12)  ;;  %v1418_v60 = vpop.eup (!%p1285_p12), %1417  ;;  %1427 = vrcp.f32 (!%p1285_p12), %v958_v49  ;;  %v948_v34 = vld [vmem:[#allocation3 + $0x50] sm:$0xff] (!%p1285_p12)  ;;  %1137 = vst.msk [vmem:[%s1688_s30 + $0x38] sm:$0xff] (!%p1285_p12), %vm693_vm1, %v1121_v50  ;;  %v1126_v49 = vld [vmem:[#allocation2 + $0x60] sm:$0xff] (!%p1285_p12) }
 0x219   : > { %709 = vst.msk [vmem:[#allocation3 + $0x78] sm:$0xff] %vm693_vm1, %v692_v32  ;;  %708 = vst.msk [vmem:[#allocation3 + $0x70] sm:$0xff] %vm693_vm1, %v691_v22  ;;  %788 = vadd.xlane.f32.xlu1 (!%p1285_p12), %v759_v52  ;;  %v965_v59 = vmax.f32 (!%p1285_p12), %v949_v27, 1e-30  ;;  %v1420_v58 = vpop.eup (!%p1285_p12), %1419  ;;  %v946_v32 = vld [vmem:[#allocation3 + $0x40] sm:$0xff] (!%p1285_p12)  ;;  %v1125_v27 = vld [vmem:[#allocation2 + $0x58] sm:$0xff] (!%p1285_p12) }
 0x21a   : > { %790 = vadd.xlane.f32.xlu0 %v760_v39  ;;  %v1422_v43 = vpop.eup %1421  ;;  %v962_v8 = vmax.f32 %v946_v32, 1e-30  ;;  %v964_v15 = vmax.f32 %v948_v34, 1e-30  ;;  %1140 = vst.msk [vmem:[%s1688_s30 + $0x50] sm:$0xff] %vm693_vm1, %v1124_v20  ;;  %1141 = vst.msk [vmem:[%s1688_s30 + $0x58] sm:$0xff] %vm693_vm1, %v1125_v27 }
 0x21b   : > { %1429 = vrcp.f32 %v965_v59  ;;  %v1128_v59 = vld [vmem:[#allocation2 + $0x70] sm:$0xff]  ;;  %1142 = vst.msk [vmem:[%s1688_s30 + $0x60] sm:$0xff] %vm693_vm1, %v1126_v49 }
 0x21c   : > { %v951_v51 = vld [vmem:[#allocation3 + $0x68] sm:$0xff]  ;;  %1431 = vrcp.f32 %v959_v31  ;;  %v1424_v63 = vpop.eup %1423  ;;  %v950_v10 = vld [vmem:[#allocation3 + $0x60] sm:$0xff]  ;;  %1144 = vst.msk [vmem:[%s1688_s30 + $0x70] sm:$0xff] %vm693_vm1, %v1128_v59 }
 0x21d   : > { %792 = vadd.xlane.f32.xlu1 %v761_v35  ;;  %v967_v29 = vmax.f32 %v951_v51, 1e-30  ;;  %v966_v17 = vmax.f32 %v950_v10, 1e-30 }
 0x21f   : > { %1433 = vrcp.f32 %v967_v29  ;;  %v763_v31 = vpop.xlane.xlu0 %762 }
 0x220   : > { %v953_v0 = vld [vmem:[#allocation3 + $0x78] sm:$0xff]  ;;  %1435 = vrcp.f32 %v960_v4  ;;  %v952_v53 = vld [vmem:[#allocation3 + $0x70] sm:$0xff]  ;;  %vm796_vm3 = vcmp.eq.f32.partialorder %v763_v31, inf  ;;  %v799_v32 = vand.u32 2147483648, %v763_v31  ;;  %vm798_vm5 = vcmp.eq.f32.partialorder %v763_v31, 0.0 }
 0x221   : > { %v969_v57 = vmax.f32 %v953_v0, 1e-30  ;;  %v1426_v33 = vpop.eup %1425  ;;  %v968_v44 = vmax.f32 %v952_v53, 1e-30 }
 0x222   : > { %v1428_v22 = vpop.eup %1427 }
 0x223   : > { %1437 = vrcp.f32 %v969_v57 }
 0x224   : > { %1439 = vrcp.f32 %v961_v6 }
 0x225   : > { %v1430_v2 = vpop.eup %1429  ;;  %1441 = vrcp.f32 %v962_v8 }
 0x226   : > { %v1432_v5 = vpop.eup %1431  ;;  %1443 = vrcp.f32 %v964_v15 }
 0x227   : > { %1445 = vrcp.f32 %v966_v17 }
 0x228   : > { %1447 = vrcp.f32 %v968_v44 }
 0x229   : > { %v1434_v25 = vpop.eup %1433 }
 0x22a   : > { %v1436_v26 = vpop.eup %1435 }
 0x22d   : > { %v1438_v21 = vpop.eup %1437 }
 0x22e   : > { %1009 = vperm.xlu1 %1416, %v1418_v60   ;;  %v1440_v54 = vpop.eup %1439  ;;  %v1129_v60 = vld [vmem:[#allocation2 + $0x78] sm:$0xff] }
 0x22f   : > { %v1442_v52 = vpop.eup %1441  ;;  %1145 = vst.msk [vmem:[%s1688_s30 + $0x78] sm:$0xff] %vm693_vm1, %v1129_v60 }
 0x230   : > { %1004 = vperm.xlu0 %1415, %v1422_v43   ;;  %v1444_v24 = vpop.eup %1443 }
 0x231   : > { %v1446_v35 = vpop.eup %1445 }
 0x232   : > { %1014 = vperm.xlu1 %1416, %v1420_v58   ;;  %v1448_v39 = vpop.eup %1447 }
 0x234   : > { %1049 = vperm.xlu0 %1415, %v1426_v33  }
 0x236   : > { %1019 = vperm.xlu1 %1416, %v1424_v63  }
 0x238   : > { %1059 = vperm.xlu0 %1415, %v1430_v2  }
 0x23a   : > { %1024 = vperm.xlu1 %1416, %v1428_v22  }
 0x23c   : > { %1069 = vperm.xlu0 %1415, %v1434_v25  }
 0x23e   : > { %1029 = vperm.xlu1 %1416, %v1432_v5  }
 0x240   : > { %1079 = vperm.xlu0 %1415, %v1438_v21  }
 0x242   : > { %1034 = vperm.xlu1 %1416, %v1436_v26  }
 0x246   : > { %1039 = vperm.xlu1 %1416, %v1440_v54  }
 0x24a   : > { %1044 = vperm.xlu1 %1416, %v1442_v52  }
 0x24e   : > { %1054 = vperm.xlu1 %1416, %v1444_v24  }
 0x252   : > { %1064 = vperm.xlu1 %1416, %v1446_v35  }
 0x256   : > { %1074 = vperm.xlu1 %1416, %v1448_v39  }
 0x28e   : > { %v767_v51 = vpop.xlane.xlu1 %766 }
 0x28f   : > { %1449 = vrsqrt.f32 %v767_v51  ;;  %v765_v29 = vpop.xlane.xlu0 %764  ;;  %vm810_vm2 = vcmp.eq.f32.partialorder %v767_v51, inf  ;;  %v813_v33 = vand.u32 2147483648, %v767_v51  ;;  %vm812_vm4 = vcmp.eq.f32.partialorder %v767_v51, 0.0 }
 0x290   : > { %1451 = vrsqrt.f32 %v763_v31  ;;  %vm803_vm6 = vcmp.eq.f32.partialorder %v765_v29, inf  ;;  %v806_v17 = vand.u32 2147483648, %v765_v29  ;;  %vm805_vm8 = vcmp.eq.f32.partialorder %v765_v29, 0.0 }
 0x292   : > { %v2142_v23 = vpop.xlane.xlu1 %768 }
 0x293   : > { %1453 = vrsqrt.f32 %v2142_v23  ;;  %v2147_v0 = vpop.xlane.xlu0 %770  ;;  %vm817_vm7 = vcmp.eq.f32.partialorder %v2142_v23, inf  ;;  %vm819_vm9 = vcmp.eq.f32.partialorder %v2142_v23, 0.0  ;;  %v820_v44 = vand.u32 2147483648, %v2142_v23 }
 0x294   : > { %1455 = vrsqrt.f32 %v765_v29  ;;  %vm824_vm12 = vcmp.eq.f32.partialorder %v2147_v0, inf  ;;  %vm826_vm13 = vcmp.eq.f32.partialorder %v2147_v0, 0.0  ;;  %v827_v47 = vand.u32 2147483648, %v2147_v0 }
 0x296   : > { %v2145_v58 = vpop.xlane.xlu1 %772 }
 0x297   : > { %1457 = vrsqrt.f32 %v2145_v58  ;;  %v2153_v63 = vpop.xlane.xlu0 %774  ;;  %vm831_vm10 = vcmp.eq.f32.partialorder %v2145_v58, inf  ;;  %vm833_vm11 = vcmp.eq.f32.partialorder %v2145_v58, 0.0  ;;  %v834_v35 = vand.u32 2147483648, %v2145_v58 }
 0x298   : > { %1459 = vrsqrt.f32 %v2147_v0  ;;  %vm838_vm15 = vcmp.eq.f32.partialorder %v2153_v63, inf  ;;  %vm840_vm0 = vcmp.eq.f32.partialorder %v2153_v63, 0.0  ;;  %v841_v28 = vand.u32 2147483648, %v2153_v63 }
 0x299   : > { %v1450_v43 = vpop.eup %1449 }
 0x29a   : > { %v1452_v4 = vpop.eup %1451  ;;  %v809_v38 = vmul.f32 %v1450_v43, %v767_v51  ;;  %v2151_v57 = vpop.xlane.xlu1 %776 }
 0x29b   : > { %v795_v6 = vmul.f32 %v1452_v4, %v763_v31  ;;  %1461 = vrsqrt.f32 %v2151_v57  ;;  %v2159_v15 = vpop.xlane.xlu0 %778  ;;  %vm845_vm14 = vcmp.eq.f32.partialorder %v2151_v57, inf  ;;  %v848_v3 = vand.u32 2147483648, %v2151_v57 }
 0x29c   : > { %v811_v22 = vsel %vm810_vm2, %v767_v51, %v809_v38  ;;  %1463 = vrsqrt.f32 %v2153_v63 }
 0x29d   : > { %v1454_v2 = vpop.eup %1453  ;;  %v814_v8 = vsel %vm812_vm4, %v813_v33, %v811_v22  ;;  %v797_v34 = vsel %vm796_vm3, %v763_v31, %v795_v6  ;;  %vm847_vm3 = vcmp.eq.f32.partialorder %v2151_v57, 0.0  ;;  %vm852_vm4 = vcmp.eq.f32.partialorder %v2159_v15, inf }
 0x29e   : > { %v1456_v5 = vpop.eup %1455  ;;  %v2157_v25 = vpop.xlane.xlu1 %780  ;;  %v908_v10 = vmax.f32 %v814_v8, 1e-12  ;;  %v800_v26 = vsel %vm798_vm5, %v799_v32, %v797_v34  ;;  %v816_v53 = vmul.f32 %v1454_v2, %v2142_v23 }
 0x29f   : > { %v802_v21 = vmul.f32 %v1456_v5, %v765_v29  ;;  %1465 = vrsqrt.f32 %v2157_v25  ;;  %v2173_v62 = vpop.xlane.xlu0 %782  ;;  %v906_v46 = vmax.f32 %v800_v26, 1e-12  ;;  %vm859_vm1 = vcmp.eq.f32.partialorder %v2157_v25, inf }
 0x2a0   : > { %1467 = vrsqrt.f32 %v2159_v15  ;;  %v818_v11 = vsel %vm817_vm7, %v2142_v23, %v816_v53  ;;  %vm861_vm2 = vcmp.eq.f32.partialorder %v2157_v25, 0.0  ;;  %v862_v51 = vand.u32 2147483648, %v2157_v25 }
 0x2a1   : > { %v1458_v54 = vpop.eup %1457  ;;  %v804_v52 = vsel %vm803_vm6, %v765_v29, %v802_v21  ;;  %1469 = vrcp.f32 %v908_v10  ;;  %v821_v59 = vsel %vm819_vm9, %v820_v44, %v818_v11  ;;  %v855_v29 = vand.u32 2147483648, %v2159_v15 }
 0x2a2   : > { %v1460_v24 = vpop.eup %1459  ;;  %v2171_v39 = vpop.xlane.xlu1 %784  ;;  %v807_v41 = vsel %vm805_vm8, %v806_v17, %v804_v52  ;;  %v830_v12 = vmul.f32 %v1458_v54, %v2145_v58  ;;  %vm854_vm6 = vcmp.eq.f32.partialorder %v2159_v15, 0.0  ;;  %v909_v2 = vmax.f32 %v821_v59, 1e-12 }
 0x2a3   : > { %1471 = vrsqrt.f32 %v2171_v39  ;;  %v823_v56 = vmul.f32 %v1460_v24, %v2147_v0  ;;  %v2193_v49 = vpop.xlane.xlu0 %786  ;;  %v907_v55 = vmax.f32 %v807_v41, 1e-12  ;;  %vm873_vm5 = vcmp.eq.f32.partialorder %v2171_v39, inf }
 0x2a4   : > { %1473 = vrsqrt.f32 %v2173_v62  ;;  %v832_v31 = vsel %vm831_vm10, %v2145_v58, %v830_v12  ;;  %vm875_vm7 = vcmp.eq.f32.partialorder %v2171_v39, 0.0  ;;  %v876_v6 = vand.u32 2147483648, %v2171_v39 }
 0x2a5   : > { %v1462_v50 = vpop.eup %1461  ;;  %1475 = vrcp.f32 %v906_v46  ;;  %v825_v43 = vsel %vm824_vm12, %v2147_v0, %v823_v56  ;;  %v835_v8 = vsel %vm833_vm11, %v834_v35, %v832_v31  ;;  %vm866_vm8 = vcmp.eq.f32.partialorder %v2173_v62, inf }
 0x2a6   : > { %v1464_v20 = vpop.eup %1463  ;;  %v2191_v27 = vpop.xlane.xlu1 %788  ;;  %v844_v4 = vmul.f32 %v1462_v50, %v2151_v57  ;;  %v869_v5 = vand.u32 2147483648, %v2173_v62  ;;  %v828_v26 = vsel %vm826_vm13, %v827_v47, %v825_v43  ;;  %vm868_vm11 = vcmp.eq.f32.partialorder %v2173_v62, 0.0 }
 0x2a7   : > { %v837_v60 = vmul.f32 %v1464_v20, %v2153_v63  ;;  %1477 = vrsqrt.f32 %v2191_v27  ;;  %v2218_v22 = vpop.xlane.xlu0 %790  ;;  %vm887_vm9 = vcmp.eq.f32.partialorder %v2191_v27, inf  ;;  %vm889_vm10 = vcmp.eq.f32.partialorder %v2191_v27, 0.0 }
 0x2a8   : > { %1479 = vrsqrt.f32 %v2193_v49  ;;  %v846_v53 = vsel %vm845_vm14, %v2151_v57, %v844_v4  ;;  %v890_v52 = vand.u32 2147483648, %v2191_v27  ;;  %v910_v46 = vmax.f32 %v828_v26, 1e-12 }
 0x2a9   : > { %v1466_v23 = vpop.eup %1465  ;;  %1481 = vrcp.f32 %v907_v55  ;;  %v839_v34 = vsel %vm838_vm15, %v2153_v63, %v837_v60  ;;  %v849_v11 = vsel %vm847_vm3, %v848_v3, %v846_v53  ;;  %vm880_vm12 = vcmp.eq.f32.partialorder %v2193_v49, inf }
 0x2aa   : > { %v1468_v38 = vpop.eup %1467  ;;  %v858_v33 = vmul.f32 %v1466_v23, %v2157_v25  ;;  %v2216_v32 = vpop.xlane.xlu1 %792  ;;  %v842_v0 = vsel %vm840_vm0, %v841_v28, %v839_v34  ;;  %vm882_vm15 = vcmp.eq.f32.partialorder %v2193_v49, 0.0  ;;  %vm894_vm0 = vcmp.eq.f32.partialorder %v2218_v22, inf }
 0x2ab   : > { %1483 = vrsqrt.f32 %v2216_v32  ;;  %v1470_v10 = vpop.eup %1469  ;;  %v851_v58 = vmul.f32 %v1468_v38, %v2159_v15  ;;  %v912_v55 = vmax.f32 %v842_v0, 1e-12  ;;  %vm901_vm13 = vcmp.eq.f32.partialorder %v2216_v32, inf }
 0x2ac   : > { %v860_v21 = vsel %vm859_vm1, %v2157_v25, %v858_v33  ;;  %1485 = vrsqrt.f32 %v2218_v22  ;;  %v911_v25 = vmax.f32 %v835_v8, 1e-12  ;;  %v988_v50 = vmul.f32 %v1470_v10, %v2031_v14 }
 0x2ad   : > { %v1472_v17 = vpop.eup %1471  ;;  %v863_v54 = vsel %vm861_vm2, %v862_v51, %v860_v21  ;;  %1487 = vrcp.f32 %v909_v2  ;;  %v853_v63 = vsel %vm852_vm4, %v2159_v15, %v851_v58  ;;  %v904_v26 = vand.u32 2147483648, %v2216_v32 }
 0x2ae   : > { %v872_v44 = vmul.f32 %v1472_v17, %v2171_v39  ;;  %v1010_v24 = vpop.permute.xlu1 %1009  ;;  %v1474_v35 = vpop.eup %1473  ;;  %v915_v41 = vmax.f32 %v863_v54, 1e-12  ;;  %1489 = vrcp.f32 %v910_v46  ;;  %vm903_vm14 = vcmp.eq.f32.partialorder %v2216_v32, 0.0 }
 0x2af   : > { %v1476_v47 = vpop.eup %1475  ;;  %v865_v57 = vmul.f32 %v1474_v35, %v2173_v62  ;;  %v1005_v60 = vpop.permute.xlu0 %1004  ;;  %v883_v54 = vand.u32 2147483648, %v2193_v49  ;;  %vm896_vm1 = vcmp.eq.f32.partialorder %v2218_v22, 0.0 }
 0x2b0   : > { %v874_v12 = vsel %vm873_vm5, %v2171_v39, %v872_v44  ;;  %v986_v20 = vmul.f32 %v1476_v47, %v2034_v1  ;;  %1491 = vrcp.f32 %v915_v41  ;;  %v913_v39 = vmax.f32 %v849_v11, 1e-12 }
 0x2b1   : > { %v1478_v56 = vpop.eup %1477  ;;  %v877_v28 = vsel %vm875_vm7, %v876_v6, %v874_v12  ;;  %1493 = vrcp.f32 %v911_v25  ;;  %v856_v1 = vsel %vm854_vm6, %v855_v29, %v853_v63  ;;  %v867_v15 = vsel %vm866_vm8, %v2173_v62, %v865_v57 }
 0x2b2   : > { %v886_v3 = vmul.f32 %v1478_v56, %v2191_v27  ;;  %v1015_v59 = vpop.permute.xlu1 %1014  ;;  %v917_v51 = vmax.f32 %v877_v28, 1e-12  ;;  %v1480_v31 = vpop.eup %1479  ;;  %v1082_v23 = vmul.f32 %v1005_v60, %v986_v20  ;;  %v870_v53 = vsel %vm868_vm11, %v869_v5, %v867_v15 }
 0x2b3   : > { %v1084_v14 = vmul.f32 %v1015_v59, %v988_v50  ;;  %v1482_v43 = vpop.eup %1481  ;;  %v879_v29 = vmul.f32 %v1480_v31, %v2193_v49  ;;  %v1050_v34 = vpop.permute.xlu0 %1049  ;;  %v916_v25 = vmax.f32 %v870_v53, 1e-12 }
 0x2b4   : > { %v888_v4 = vsel %vm887_vm9, %v2191_v27, %v886_v3  ;;  %1495 = vrcp.f32 %v917_v51  ;;  %v987_v6 = vmul.f32 %v1482_v43, %v2044_v19  ;;  %1098 = vst [vmem:[%s1683_s27] sm:$0xff] %v1082_v23  ;;  %v914_v19 = vmax.f32 %v856_v1, 1e-12 }
 0x2b5   : > { %v1484_v38 = vpop.eup %1483  ;;  %v891_v33 = vsel %vm889_vm10, %v890_v52, %v888_v4  ;;  %1100 = vst [vmem:[%s1683_s27 + $0x10] sm:$0xff] %v1084_v14  ;;  %1497 = vrcp.f32 %v912_v55  ;;  %v881_v52 = vsel %vm880_vm12, %v2193_v49, %v879_v29  ;;  %v897_v49 = vand.u32 2147483648, %v2218_v22 }
 0x2b6   : > { %v900_v2 = vmul.f32 %v1484_v38, %v2216_v32  ;;  %v1020_v8 = vpop.permute.xlu1 %1019  ;;  %v919_v27 = vmax.f32 %v891_v33, 1e-12  ;;  %v1486_v10 = vpop.eup %1485  ;;  %v1083_v21 = vmul.f32 %v1010_v24, %v987_v6  ;;  %1499 = vrcp.f32 %v913_v39 }
 0x2b7   : > { %v1488_v58 = vpop.eup %1487  ;;  %v884_v11 = vsel %vm882_vm15, %v883_v54, %v881_v52 }
 0x2b8   : > { %v902_v17 = vsel %vm901_vm13, %v2216_v32, %v900_v2  ;;  %1501 = vrcp.f32 %v919_v27  ;;  %1099 = vst [vmem:[%s1683_s27 + $0x8] sm:$0xff] %v1083_v21  ;;  %v989_v44 = vmul.f32 %v1488_v58, %v2037_v7  ;;  %v893_v32 = vmul.f32 %v1486_v10, %v2218_v22  ;;  %v1490_v46 = vpop.eup %1489  ;;  %v1060_v7 = vpop.permute.xlu0 %1059 }
 0x2b9   : > { %v905_v0 = vsel %vm903_vm14, %v904_v26, %v902_v17  ;;  %1503 = vrcp.f32 %v914_v19  ;;  %v990_v41 = vmul.f32 %v1490_v46, %v2054_v9 }
 0x2ba   : > { %v1025_v24 = vpop.permute.xlu1 %1024  ;;  %v921_v35 = vmax.f32 %v905_v0, 1e-12  ;;  %v1085_v62 = vmul.f32 %v1020_v8, %v989_v44  ;;  %v1492_v5 = vpop.eup %1491  ;;  %v895_v50 = vsel %vm894_vm0, %v2218_v22, %v893_v32 }
 0x2bb   : > { %v1494_v47 = vpop.eup %1493  ;;  %v995_v63 = vmul.f32 %v1492_v5, %v2071_v18  ;;  %v1086_v56 = vmul.f32 %v1025_v24, %v990_v41  ;;  %v918_v18 = vmax.f32 %v884_v11, 1e-12  ;;  %v898_v60 = vsel %vm896_vm1, %v897_v49, %v895_v50 }
 0x2bc   : > { %1505 = vrcp.f32 %v921_v35  ;;  %1101 = vst [vmem:[%s1683_s27 + $0x18] sm:$0xff] %v1085_v62  ;;  %v991_v9 = vmul.f32 %v1494_v47, %v2051_v13  ;;  %v1070_v14 = vpop.permute.xlu0 %1069  ;;  %v920_v39 = vmax.f32 %v898_v60, 1e-12 }
 0x2bd   : > { %v1091_v55 = vmul.f32 %v1050_v34, %v995_v63  ;;  %1102 = vst [vmem:[%s1683_s27 + $0x20] sm:$0xff] %v1086_v56  ;;  %1507 = vrcp.f32 %v916_v25 }
 0x2be   : > { %v1496_v12 = vpop.eup %1495  ;;  %v1030_v28 = vpop.permute.xlu1 %1029  ;;  %1509 = vrcp.f32 %v918_v18 }
 0x2bf   : > { %v1498_v20 = vpop.eup %1497  ;;  %v997_v57 = vmul.f32 %v1496_v12, %v2081_v40  ;;  %v1087_v3 = vmul.f32 %v1030_v28, %v991_v9  ;;  %1107 = vst [vmem:[%s1683_s27 + $0x48] sm:$0xff] %v1091_v55  ;;  %1511 = vrcp.f32 %v920_v39 }
 0x2c0   : > { %v1500_v59 = vpop.eup %1499  ;;  %v992_v22 = vmul.f32 %v1498_v20, %v2064_v37  ;;  %v1080_v15 = vpop.permute.xlu0 %1079 }
 0x2c1   : > { %v1093_v51 = vmul.f32 %v1060_v7, %v997_v57  ;;  %1103 = vst [vmem:[%s1683_s27 + $0x28] sm:$0xff] %v1087_v3  ;;  %v993_v4 = vmul.f32 %v1500_v59, %v2061_v16 }
 0x2c2   : > { %v1502_v31 = vpop.eup %1501  ;;  %v1035_v13 = vpop.permute.xlu1 %1034 }
 0x2c3   : > { %1109 = vst [vmem:[%s1683_s27 + $0x58] sm:$0xff] %v1093_v51  ;;  %v1088_v23 = vmul.f32 %v1035_v13, %v992_v22  ;;  %v999_v40 = vmul.f32 %v1502_v31, %v2091_v42  ;;  %v1504_v43 = vpop.eup %1503 }
 0x2c4   : > { %v994_v29 = vmul.f32 %v1504_v43, %v2074_v36 }
 0x2c5   : > { %1104 = vst [vmem:[%s1683_s27 + $0x30] sm:$0xff] %v1088_v23  ;;  %v1095_v1 = vmul.f32 %v1070_v14, %v999_v40 }
 0x2c6   : > { %v1506_v37 = vpop.eup %1505  ;;  %v1040_v38 = vpop.permute.xlu1 %1039 }
 0x2c7   : > { %1111 = vst [vmem:[%s1683_s27 + $0x68] sm:$0xff] %v1095_v1  ;;  %v1089_v33 = vmul.f32 %v1040_v38, %v993_v4  ;;  %v1001_v6 = vmul.f32 %v1506_v37, %v2101_v61  ;;  %v1508_v2 = vpop.eup %1507 }
 0x2c8   : > { %v996_v16 = vmul.f32 %v1508_v2, %v2084_v30  ;;  %v1510_v27 = vpop.eup %1509 }
 0x2c9   : > { %1105 = vst [vmem:[%s1683_s27 + $0x38] sm:$0xff] %v1089_v33  ;;  %v1097_v42 = vmul.f32 %v1080_v15, %v1001_v6  ;;  %v998_v61 = vmul.f32 %v1510_v27, %v2094_v48  ;;  %v1512_v21 = vpop.eup %1511 }
 0x2ca   : > { %v1045_v8 = vpop.permute.xlu1 %1044  ;;  %v1000_v36 = vmul.f32 %v1512_v21, %v2104_v45 }
 0x2cb   : > { %1113 = vst [vmem:[%s1683_s27 + $0x78] sm:$0xff] %v1097_v42  ;;  %v1090_v34 = vmul.f32 %v1045_v8, %v994_v29 }
 0x2cd   : > { %1106 = vst [vmem:[%s1683_s27 + $0x40] sm:$0xff] %v1090_v34 }
 0x2ce   : > { %v1055_v10 = vpop.permute.xlu1 %1054 }
 0x2cf   : > { %v1092_v26 = vmul.f32 %v1055_v10, %v996_v16 }
 0x2d1   : > { %1108 = vst [vmem:[%s1683_s27 + $0x50] sm:$0xff] %v1092_v26 }
 0x2d2   : > { %v1065_v19 = vpop.permute.xlu1 %1064 }
 0x2d3   : > { %v1094_v58 = vmul.f32 %v1065_v19, %v998_v61 }
 0x2d5   : > { %1110 = vst [vmem:[%s1683_s27 + $0x60] sm:$0xff] %v1094_v58 }
 0x2d6   : > { %v1075_v17 = vpop.permute.xlu1 %1074 }
 0x2d7   : > { %v1096_v53 = vmul.f32 %v1075_v17, %v1000_v36 }
 0x2d9   : > { %1112 = vst [vmem:[%s1683_s27 + $0x70] sm:$0xff] %v1096_v53 }
 0x2da PF: > { %s14_s18 = sadd.s32 1, %s1567_s18   ;;  %s2367_s12 = smov %s1547_s13 }
 0x2db   : > { %p11_p13 = scmp.ge.s32.totalorder %s14_s18, 6   ;;  %s2368_s13 = smov %s1644_s25 }
 0x2dc   : > { %s2369_s14 = smov %s1559_s16  ;;  %s2370_s15 = smov %s1563_s17 }
 0x2dd   : > { %s2371_s16 = smov %s2374_s19  ;;  %s2372_s17 = smov %s2378_s20 }
 0x2de   :  { %13 = sbr.rel (!%p11_p13) target bundleno = 4 (0x4), region = 124 }

// kernel: agnn_conv.3
= control target key start
LH: loop header
LB: loop body
LE: loop exit
PB: predicated region body
PF: predicated region fallthrough
CT: control target
= control target key end

     0   :  { %s1575_s0 = inlined_call_operand.vmem [shape: f32[256,256], index: 0, kind: input, shape index: {}]   ;;  %s1576_s1 = inlined_call_operand.vmem [shape: f32[256,1], index: 1, kind: input, shape index: {}]   ;;  %s1577_s2 = inlined_call_operand.vmem [shape: f32[256,128], index: 2, kind: input, shape index: {}]   ;;  %s1578_s3 = inlined_call_operand.vmem [shape: f32[256,128], index: 3, kind: input, shape index: {}]   ;;  %s1579_s4 = inlined_call_operand.<no memory space> [shape: f32[1], index: 4, kind: input, shape index: {}]   ;;  %s1580_s5 = inlined_call_operand.vmem [shape: f32[256,128], index: 5, kind: output, shape index: {}]  }
   0x1   :  { %10 = sst [smem:[#allocation3]] %s1579_s4 }
   0x2   :  { %s1367_s20 = smov 0   ;;  %s1369_s21 = smov 0  }
   0x3   :  { %s1371_s22 = smov 0   ;;  %s1373_s23 = smov 0  }
   0x4   :  { %s1375_s24 = smov 0   ;;  %s1377_s25 = smov 0  }
   0x5   :  { %s1379_s26 = smov 0  }
   0x6 LB: > { %s25_s4 = sadd.s32 1, %s1322_s24  ;;  %s28_s27 = sadd.s32 1, %s1326_s25  ;;  %s1330_s26 = sphi %s1379_s26, %s16_s26   ;;  %s1326_s25 = sphi %s1377_s25, %s1586_s25   ;;  %s1322_s24 = sphi %s1375_s24, %s1585_s24   ;;  %s1318_s23 = sphi %s1373_s23, %s1584_s23   ;;  %s1314_s22 = sphi %s1371_s22, %s1583_s22   ;;  %s1310_s21 = sphi %s1369_s21, %s1582_s21   ;;  %s1306_s20 = sphi %s1367_s20, %s1581_s20  }
   0x7   : > { %p26_p0 = scmp.ge.s32.totalorder %s25_s4, 2  ;;  %p44_p1 = scmp.ne.s32.totalorder %s1310_s21, %s1306_s20 }
   0x8   : > { %p45_p2 = scmp.eq.s32.totalorder %s1330_s26, 0  ;;  %s37_s6 = sadd.s32 1, %s1310_s21 }
   0x9   : > { %s1588_s4 = smov (%p26_p0, %s25_s4), 0  ;;  %s1590_s27 = smov (!%p26_p0, %s28_s27), %s1326_s25 }
   0xa   : > { %p46_p3 = por %p45_p2, %p44_p1  ;;  %p30_p4 = scmp.ge.s32.totalorder %s1590_s27, 2 }
   0xb   : > { %s32_s28 = ssub.s32 %s1322_s24, %s1588_s4  ;;  %p1028_p6 = scmp.ge.s32.totalorder %s1330_s26, 4 }
   0xc   : > { %s1592_s27 = smov (%p30_p4, %s1590_s27), 0 }
   0xd   : > { %s33_s29 = ssub.s32 %s1326_s25, %s1592_s27  ;;  %198 = sbr.rel (%p1028_p6) target bundleno = 34 (0x22), region = 20 }
   0xe   : > { %s34_s30 = sor.u32 %s33_s29, %s32_s28 }
   0xf   : > { %p35_p5 = scmp.eq.s32.totalorder %s34_s30, 0 }
  0x11   : > { %s1418_s7 = scalar_select %p35_p5, %s1310_s21, %s37_s6  }
  0x14   : > { %201 = sbr.rel (!%p46_p3) target bundleno = 34 (0x22), region = 24  ;;  %s203_s8 = sand.u32 (%p46_p3), 1, %s1310_s21  }
  0x15   : > { %s1047_s9 = sshll.u32 (%p46_p3), %s1322_s24, 5  ;;  %s1029_s10 = sshll.u32 (%p46_p3), %s203_s8, 7 }
  0x16   : > { %s208_s11 = sadd.s32 (%p46_p3), %s1326_s25, %s1047_s9  ;;  %s205_s16 = scalar_lea.vmem (%p46_p3), [#allocation4], %s1029_s10 }
  0x17   : > { %s1032_s12 = sshll.u32 (%p46_p3), %s208_s11, 3 }
  0x18   : > { %s1427_s15 = scalar_lea.vmem (%p46_p3), %s1575_s0, %s1032_s12 }
  0x19   : > { %v268_v0 = vld [vmem:[%s1427_s15] sm:$0xff] (%p46_p3)  ;;  %v270_v1 = vld [vmem:[%s1427_s15 + $0x10] sm:$0xff] (%p46_p3) }
  0x1a   : > { %v272_v2 = vld [vmem:[%s1427_s15 + $0x20] sm:$0xff] (%p46_p3)  ;;  %269 = vst [vmem:[%s205_s16] sm:$0xff] (%p46_p3), %v268_v0  ;;  %271 = vst [vmem:[%s205_s16 + $0x8] sm:$0xff] (%p46_p3), %v270_v1  ;;  %v274_v3 = vld [vmem:[%s1427_s15 + $0x30] sm:$0xff] (%p46_p3) }
  0x1b   : > { %273 = vst [vmem:[%s205_s16 + $0x10] sm:$0xff] %v272_v2  ;;  %v276_v4 = vld [vmem:[%s1427_s15 + $0x40] sm:$0xff]  ;;  %v278_v5 = vld [vmem:[%s1427_s15 + $0x50] sm:$0xff]  ;;  %275 = vst [vmem:[%s205_s16 + $0x18] sm:$0xff] %v274_v3 }
  0x1c   : > { %277 = vst [vmem:[%s205_s16 + $0x20] sm:$0xff] %v276_v4  ;;  %279 = vst [vmem:[%s205_s16 + $0x28] sm:$0xff] %v278_v5  ;;  %v280_v6 = vld [vmem:[%s1427_s15 + $0x60] sm:$0xff]  ;;  %v282_v7 = vld [vmem:[%s1427_s15 + $0x70] sm:$0xff] }
  0x1d   : > { %v284_v8 = vld [vmem:[%s1427_s15 + $0x80] sm:$0xff]  ;;  %281 = vst [vmem:[%s205_s16 + $0x30] sm:$0xff] %v280_v6  ;;  %283 = vst [vmem:[%s205_s16 + $0x38] sm:$0xff] %v282_v7  ;;  %v286_v9 = vld [vmem:[%s1427_s15 + $0x90] sm:$0xff] }
  0x1e   : > { %285 = vst [vmem:[%s205_s16 + $0x40] sm:$0xff] %v284_v8  ;;  %v288_v10 = vld [vmem:[%s1427_s15 + $0xa0] sm:$0xff]  ;;  %v290_v11 = vld [vmem:[%s1427_s15 + $0xb0] sm:$0xff]  ;;  %287 = vst [vmem:[%s205_s16 + $0x48] sm:$0xff] %v286_v9 }
  0x1f   : > { %289 = vst [vmem:[%s205_s16 + $0x50] sm:$0xff] %v288_v10  ;;  %291 = vst [vmem:[%s205_s16 + $0x58] sm:$0xff] %v290_v11  ;;  %v292_v12 = vld [vmem:[%s1427_s15 + $0xc0] sm:$0xff]  ;;  %v294_v13 = vld [vmem:[%s1427_s15 + $0xd0] sm:$0xff] }
  0x20   : > { %v296_v14 = vld [vmem:[%s1427_s15 + $0xe0] sm:$0xff]  ;;  %293 = vst [vmem:[%s205_s16 + $0x60] sm:$0xff] %v292_v12  ;;  %295 = vst [vmem:[%s205_s16 + $0x68] sm:$0xff] %v294_v13  ;;  %v298_v15 = vld [vmem:[%s1427_s15 + $0xf0] sm:$0xff] }
  0x21   : > { %297 = vst [vmem:[%s205_s16 + $0x70] sm:$0xff] %v296_v14  ;;  %299 = vst [vmem:[%s205_s16 + $0x78] sm:$0xff] %v298_v15 }
  0x22 PF: > { %p1033_p7 = scmp.ge.s32.totalorder %s1330_s26, 1  ;;  %p331_p8 = scmp.lt.s32.totalorder %s1330_s26, 5 }
  0x24   : > { %p332_p9 = pnand %p1033_p7, %p331_p8 }
  0x25   : > { %s338_s17 = sand.u32 (!%p332_p9), 1, %s1306_s20   ;;  %s1035_s18 = sshll.u32 (!%p332_p9), %s1314_s22, 4 }
  0x26   : > { %335 = sbr.rel (%p332_p9) target bundleno = 616 (0x268), region = 74  ;;  %s1034_s19 = sshll.u32 (!%p332_p9), %s338_s17, 7 }
  0x27   : > { %p382_p10 = scmp.lt.s32.totalorder (!%p332_p9), %s1035_s18, 31  ;;  %s1039_s28 = sshll.u32 (!%p332_p9), %s1318_s23, 4 }
  0x28   : > { %p394_p11 = scmp.lt.s32.totalorder (!%p332_p9), %s1039_s28, 31  ;;  %s1470_s17 = scalar_lea.vmem (!%p332_p9), [#allocation4], %s1034_s19 }
  0x29   : > { %p1043_p12 = scmp.ne.s32.totalorder (!%p332_p9), %s1314_s22, 0 }
  0x2d   : > { %s1594_s18 = smov (!%p382_p10, %s1035_s18), 31  ;;  %s1596_s28 = smov (!%p394_p11, %s1039_s28), 31 }
  0x2e   : > { %s1036_s29 = sshll.u32 %s1594_s18, 3  ;;  %s1040_s12 = sshll.u32 %s1596_s28, 3  ;;  %v1332_v16 = vmov (!%p1043_p12), 0.0  }
  0x2f   : > { %s1453_s8 = scalar_lea.vmem %s1576_s1, %s1036_s29  ;;  %s1458_s11 = scalar_lea.vmem %s1577_s2, %s1036_s29  ;;  %409 = vst [vmem:[#allocation2] sm:$0xff] (!%p1043_p12), %v1332_v16  ;;  %410 = vst [vmem:[#allocation2 + $0x8] sm:$0xff] (!%p1043_p12), %v1332_v16 }
  0x30   : > { %s1463_s14 = scalar_lea.vmem %s1578_s3, %s1040_s12  ;;  %s1468_s16 = scalar_lea.vmem %s1580_s5, %s1040_s12  ;;  %411 = vst [vmem:[#allocation2 + $0x10] sm:$0xff] (!%p1043_p12), %v1332_v16  ;;  %412 = vst [vmem:[#allocation2 + $0x18] sm:$0xff] (!%p1043_p12), %v1332_v16 }
  0x31   : > { %408 = sbr.rel (%p1043_p12) target bundleno = 56 (0x38), region = 82  ;;  %413 = vst [vmem:[#allocation2 + $0x20] sm:$0xff] (!%p1043_p12), %v1332_v16  ;;  %414 = vst [vmem:[#allocation2 + $0x28] sm:$0xff] (!%p1043_p12), %v1332_v16 }
  0x32   : > { %415 = vst [vmem:[#allocation2 + $0x30] sm:$0xff] (!%p1043_p12), %v1332_v16  ;;  %416 = vst [vmem:[#allocation2 + $0x38] sm:$0xff] (!%p1043_p12), %v1332_v16 }
  0x33   : > { %417 = vst [vmem:[#allocation2 + $0x40] sm:$0xff] (!%p1043_p12), %v1332_v16  ;;  %418 = vst [vmem:[#allocation2 + $0x48] sm:$0xff] (!%p1043_p12), %v1332_v16 }
  0x34   : > { %419 = vst [vmem:[#allocation2 + $0x50] sm:$0xff] (!%p1043_p12), %v1332_v16  ;;  %420 = vst [vmem:[#allocation2 + $0x58] sm:$0xff] (!%p1043_p12), %v1332_v16 }
  0x35   : > { %421 = vst [vmem:[#allocation2 + $0x60] sm:$0xff] (!%p1043_p12), %v1332_v16  ;;  %422 = vst [vmem:[#allocation2 + $0x68] sm:$0xff] (!%p1043_p12), %v1332_v16 }
  0x36   : > { %423 = vst [vmem:[#allocation2 + $0x70] sm:$0xff] (!%p1043_p12), %v1332_v16  ;;  %424 = vst [vmem:[#allocation2 + $0x78] sm:$0xff] (!%p1043_p12), %v1332_v16 }
  0x38 PF: > { %v443_v17 = vld [vmem:[%s1453_s8 + $0x10] sm:$0xff]  ;;  %v441_v18 = vld [vmem:[%s1453_s8] sm:$0xff]  ;;  %v1333_v19 = vmov 0   ;;  %v444_v20 = vld [vmem:[%s1453_s8 + $0x18] sm:$0xff]  ;;  %p1044_p13 = scmp.ne.s32.totalorder %s1314_s22, 1 }
  0x39   : > { %1243 = vset.pattern.permute.xlu1 %v1333_v19  ;;  %1242 = vset.pattern.permute.xlu0 %v1333_v19  ;;  %v442_v21 = vld [vmem:[%s1453_s8 + $0x8] sm:$0xff]  ;;  %v445_v23 = vld [vmem:[%s1453_s8 + $0x20] sm:$0xff]  ;;  %v448_v24 = vld [vmem:[%s1453_s8 + $0x38] sm:$0xff]  ;;  %s830_s18 = sld [smem:[#allocation3]] (!%p1044_p13) }
  0x3a   : > { %469 = vperm.xlu1 %1243, %v443_v17   ;;  %459 = vperm.xlu0 %1242, %v441_v18   ;;  %v446_v22 = vld [vmem:[%s1453_s8 + $0x28] sm:$0xff]  ;;  %v447_v25 = vld [vmem:[%s1453_s8 + $0x30] sm:$0xff]  ;;  %v449_v27 = vld [vmem:[%s1453_s8 + $0x40] sm:$0xff] }
  0x3b   : > { %v450_v26 = vld [vmem:[%s1453_s8 + $0x48] sm:$0xff]  ;;  %v452_v28 = vld [vmem:[%s1453_s8 + $0x58] sm:$0xff]  ;;  %v451_v29 = vld [vmem:[%s1453_s8 + $0x50] sm:$0xff] }
  0x3c   : > { %v454_v30 = vld [vmem:[%s1453_s8 + $0x68] sm:$0xff]  ;;  %v453_v31 = vld [vmem:[%s1453_s8 + $0x60] sm:$0xff]  ;;  %v456_v32 = vld [vmem:[%s1453_s8 + $0x78] sm:$0xff] }
  0x3d   : > { %v455_v33 = vld [vmem:[%s1453_s8 + $0x70] sm:$0xff]  ;;  %v633_v34 = vld [vmem:[%s1458_s11] sm:$0xff]  ;;  %v634_v35 = vld [vmem:[%s1458_s11 + $0x8] sm:$0xff] }
  0x3e   : > { %474 = vperm.xlu1 %1243, %v444_v20   ;;  %464 = vperm.xlu0 %1242, %v442_v21   ;;  %v635_v36 = vld [vmem:[%s1458_s11 + $0x10] sm:$0xff]  ;;  %v1136_v37 = vpack.c.bf16 %v634_v35, %v633_v34  ;;  %v636_v38 = vld [vmem:[%s1458_s11 + $0x18] sm:$0xff]  ;;  %v637_v40 = vld [vmem:[%s1458_s11 + $0x20] sm:$0xff] }
  0x3f   : > { %v1140_v39 = vpack.c.bf16 %v636_v38, %v635_v36  ;;  %v638_v41 = vld [vmem:[%s1458_s11 + $0x28] sm:$0xff]  ;;  %v639_v43 = vld [vmem:[%s1458_s11 + $0x30] sm:$0xff]  ;;  %v640_v44 = vld [vmem:[%s1458_s11 + $0x38] sm:$0xff]  ;;  %s831_s19 = sadd.f32 (!%p1044_p13), 1.0, %s830_s18 }
  0x40   : > { %1137 = vmatprep.subr.bf16.mxu0 %v1136_v37  ;;  %1168 = vmatprep.subr.bf16.mxu1 %v1136_v37  ;;  %v1144_v42 = vpack.c.bf16 %v638_v41, %v637_v40  ;;  %v1148_v45 = vpack.c.bf16 %v640_v44, %v639_v43  ;;  %v641_v46 = vld [vmem:[%s1458_s11 + $0x40] sm:$0xff]  ;;  %v642_v47 = vld [vmem:[%s1458_s11 + $0x48] sm:$0xff]  ;;  %v643_v49 = vld [vmem:[%s1458_s11 + $0x50] sm:$0xff] }
  0x41   : > { %1139 = vmatpush3.bf16.msra.mxu0 %v1136_v37  ;;  %1176 = vmatpush3.bf16.msra.mxu1 %v1136_v37  ;;  %v1152_v48 = vpack.c.bf16 %v642_v47, %v641_v46  ;;  %v644_v50 = vld [vmem:[%s1458_s11 + $0x58] sm:$0xff]  ;;  %v645_v52 = vld [vmem:[%s1458_s11 + $0x60] sm:$0xff]  ;;  %v646_v53 = vld [vmem:[%s1458_s11 + $0x68] sm:$0xff] }
  0x42   : > { %484 = vperm.xlu1 %1243, %v446_v22   ;;  %479 = vperm.xlu0 %1242, %v445_v23   ;;  %v1156_v51 = vpack.c.bf16 %v644_v50, %v643_v49  ;;  %v1160_v54 = vpack.c.bf16 %v646_v53, %v645_v52  ;;  %v425_v55 = vld [vmem:[%s1470_s17] sm:$0xff]  ;;  %v427_v57 = vld [vmem:[%s1470_s17 + $0x10] sm:$0xff]  ;;  %v426_v59 = vld [vmem:[%s1470_s17 + $0x8] sm:$0xff] }
  0x43   : > { %1141 = vmatprep.subr.bf16.mxu0 %v1140_v39  ;;  %1169 = vmatprep.subr.bf16.mxu1 %v1140_v39  ;;  %v428_v1 = vld [vmem:[%s1470_s17 + $0x18] sm:$0xff]  ;;  %v429_v7 = vld [vmem:[%s1470_s17 + $0x20] sm:$0xff]  ;;  %v430_v11 = vld [vmem:[%s1470_s17 + $0x28] sm:$0xff] }
  0x44   : > { %v647_v12 = vld [vmem:[%s1458_s11 + $0x70] sm:$0xff]  ;;  %v648_v13 = vld [vmem:[%s1458_s11 + $0x78] sm:$0xff]  ;;  %v434_v34 = vld [vmem:[%s1470_s17 + $0x48] sm:$0xff] }
  0x45   : > { %1143 = vmatpush3.bf16.msra.mxu0 %v1140_v39  ;;  %1177 = vmatpush3.bf16.msra.mxu1 %v1140_v39  ;;  %v1164_v15 = vpack.c.bf16 %v648_v13, %v647_v12  ;;  %v431_v19 = vld [vmem:[%s1470_s17 + $0x30] sm:$0xff]  ;;  %v436_v44 = vld [vmem:[%s1470_s17 + $0x58] sm:$0xff]  ;;  %v437_v49 = vld [vmem:[%s1470_s17 + $0x60] sm:$0xff] }
  0x46   : > { %494 = vperm.xlu1 %1243, %v448_v24   ;;  %489 = vperm.xlu0 %1242, %v447_v25   ;;  %v432_v25 = vld [vmem:[%s1470_s17 + $0x38] sm:$0xff]  ;;  %v435_v39 = vld [vmem:[%s1470_s17 + $0x50] sm:$0xff] }
  0x47   : > { %1145 = vmatprep.subr.bf16.mxu0 %v1144_v42  ;;  %1170 = vmatprep.subr.bf16.mxu1 %v1144_v42 }
  0x49   : > { %1147 = vmatpush3.bf16.msra.mxu0 %v1144_v42  ;;  %1178 = vmatpush3.bf16.msra.mxu1 %v1144_v42 }
  0x4a   : > { %504 = vperm.xlu1 %1243, %v450_v26   ;;  %499 = vperm.xlu0 %1242, %v449_v27  }
  0x4b   : > { %1149 = vmatprep.subr.bf16.mxu0 %v1148_v45  ;;  %1171 = vmatprep.subr.bf16.mxu1 %v1148_v45 }
  0x4d   : > { %1151 = vmatpush3.bf16.msra.mxu0 %v1148_v45  ;;  %1179 = vmatpush3.bf16.msra.mxu1 %v1148_v45 }
  0x4e   : > { %514 = vperm.xlu1 %1243, %v452_v28   ;;  %509 = vperm.xlu0 %1242, %v451_v29   ;;  %v433_v29 = vld [vmem:[%s1470_s17 + $0x40] sm:$0xff] }
  0x4f   : > { %1153 = vmatprep.subr.bf16.mxu0 %v1152_v48  ;;  %1172 = vmatprep.subr.bf16.mxu1 %v1152_v48 }
  0x51   : > { %1155 = vmatpush3.bf16.msra.mxu0 %v1152_v48  ;;  %1180 = vmatpush3.bf16.msra.mxu1 %v1152_v48 }
  0x52   : > { %524 = vperm.xlu1 %1243, %v454_v30   ;;  %519 = vperm.xlu0 %1242, %v453_v31  }
  0x53   : > { %1157 = vmatprep.subr.bf16.mxu0 %v1156_v51  ;;  %1173 = vmatprep.subr.bf16.mxu1 %v1156_v51 }
  0x55   : > { %1159 = vmatpush3.bf16.msra.mxu0 %v1156_v51  ;;  %1181 = vmatpush3.bf16.msra.mxu1 %v1156_v51 }
  0x56   : > { %534 = vperm.xlu1 %1243, %v456_v32   ;;  %529 = vperm.xlu0 %1242, %v455_v33  }
  0x57   : > { %1161 = vmatprep.subr.bf16.mxu0 %v1160_v54  ;;  %1174 = vmatprep.subr.bf16.mxu1 %v1160_v54 }
  0x59   : > { %1163 = vmatpush3.bf16.msra.mxu0 %v1160_v54  ;;  %1182 = vmatpush3.bf16.msra.mxu1 %v1160_v54  ;;  %v438_v54 = vld [vmem:[%s1470_s17 + $0x68] sm:$0xff] }
  0x5a   : > { %1165 = vmatprep.subr.bf16.mxu0 %v1164_v15  ;;  %1175 = vmatprep.subr.bf16.mxu1 %v1164_v15 }
  0x5d   : > { %1167 = vmatpush3.bf16.msra.mxu0 %v1164_v15  ;;  %1183 = vmatpush3.bf16.msra.mxu1 %v1164_v15 }
  0xb9   : > { %v460_v56 = vpop.permute.xlu0 %459  ;;  %v470_v60 = vpop.permute.xlu1 %469 }
  0xba   : > { %v537_v58 = vsub.f32 %v425_v55, %v460_v56  ;;  %v539_v62 = vsub.f32 %v427_v57, %v470_v60 }
  0xbc   : > { %v553_v61 = vmul.f32 1.442695, %v537_v58  ;;  %v557_v3 = vmul.f32 1.442695, %v539_v62 }
  0xbd   : > { %v465_v63 = vpop.permute.xlu0 %464  ;;  %v475_v4 = vpop.permute.xlu1 %474 }
  0xbe   : > { %v538_v0 = vsub.f32 %v426_v59, %v465_v63  ;;  %1244 = vpow2.f32 %v553_v61  ;;  %v540_v5 = vsub.f32 %v428_v1, %v475_v4  ;;  %v439_v59 = vld [vmem:[%s1470_s17 + $0x70] sm:$0xff] }
  0xc0   : > { %v555_v2 = vmul.f32 1.442695, %v538_v0  ;;  %v559_v8 = vmul.f32 1.442695, %v540_v5  ;;  %v440_v0 = vld [vmem:[%s1470_s17 + $0x78] sm:$0xff] }
  0xc1   : > { %v480_v6 = vpop.permute.xlu0 %479  ;;  %v485_v10 = vpop.permute.xlu1 %484 }
  0xc2   : > { %1246 = vpow2.f32 %v555_v2  ;;  %v541_v9 = vsub.f32 %v429_v7, %v480_v6  ;;  %v542_v16 = vsub.f32 %v430_v11, %v485_v10 }
  0xc3   : > { %1248 = vpow2.f32 %v557_v3 }
  0xc4   : > { %1250 = vpow2.f32 %v559_v8  ;;  %v561_v17 = vmul.f32 1.442695, %v541_v9  ;;  %v563_v22 = vmul.f32 1.442695, %v542_v16 }
  0xc5   : > { %v490_v18 = vpop.permute.xlu0 %489  ;;  %v495_v24 = vpop.permute.xlu1 %494 }
  0xc6   : > { %1252 = vpow2.f32 %v561_v17  ;;  %v543_v23 = vsub.f32 %v431_v19, %v490_v18  ;;  %v544_v26 = vsub.f32 %v432_v25, %v495_v24 }
  0xc7   : > { %1254 = vpow2.f32 %v563_v22 }
  0xc8   : > { %v1245_v14 = vpop.eup %1244  ;;  %v565_v27 = vmul.f32 1.442695, %v543_v23  ;;  %v567_v31 = vmul.f32 1.442695, %v544_v26  ;;  %v586_v26 = vld [vmem:[#allocation2 + $0x8] sm:$0xff] }
  0xc9   : > { %601 = vxpose.xlu0.b32.start [1/16] %v1245_v14, 128  ;;  %v500_v28 = vpop.permute.xlu0 %499  ;;  %v505_v33 = vpop.permute.xlu1 %504 }
  0xca   : > { %1256 = vpow2.f32 %v565_v27  ;;  %v545_v32 = vsub.f32 %v433_v29, %v500_v28  ;;  %v546_v36 = vsub.f32 %v434_v34, %v505_v33  ;;  %v585_v27 = vld [vmem:[#allocation2] sm:$0xff]  ;;  %v587_v33 = vld [vmem:[#allocation2 + $0x10] sm:$0xff] }
  0xcb   : > { %1258 = vpow2.f32 %v567_v31 }
  0xcc   : > { %v1247_v20 = vpop.eup %1246  ;;  %v569_v37 = vmul.f32 1.442695, %v545_v32  ;;  %v571_v41 = vmul.f32 1.442695, %v546_v36  ;;  %v588_v32 = vld [vmem:[#allocation2 + $0x18] sm:$0xff] }
  0xcd   : > { %602 = vxpose.xlu0.b32.cont [2/16] %v1247_v20, 128  ;;  %v1249_v21 = vpop.eup %1248  ;;  %v510_v38 = vpop.permute.xlu0 %509 }
  0xce   : > { %v1251_v30 = vpop.eup %1250  ;;  %1260 = vpow2.f32 %v569_v37  ;;  %v547_v42 = vsub.f32 %v435_v39, %v510_v38  ;;  %v515_v43 = vpop.permute.xlu1 %514  ;;  %v590_v38 = vld [vmem:[#allocation2 + $0x28] sm:$0xff]  ;;  %v589_v39 = vld [vmem:[#allocation2 + $0x20] sm:$0xff] }
  0xcf   : > { %1262 = vpow2.f32 %v571_v41  ;;  %v548_v46 = vsub.f32 %v436_v44, %v515_v43  ;;  %v592_v44 = vld [vmem:[#allocation2 + $0x38] sm:$0xff] }
  0xd0   : > { %v1253_v35 = vpop.eup %1252  ;;  %v573_v47 = vmul.f32 1.442695, %v547_v42 }
  0xd1   : > { %603 = vxpose.xlu0.b32.cont [3/16] %v1249_v21, 128  ;;  %v1255_v40 = vpop.eup %1254  ;;  %v520_v48 = vpop.permute.xlu0 %519  ;;  %v575_v51 = vmul.f32 1.442695, %v548_v46 }
  0xd2   : > { %1264 = vpow2.f32 %v573_v47  ;;  %v549_v52 = vsub.f32 %v437_v49, %v520_v48  ;;  %v525_v53 = vpop.permute.xlu1 %524 }
  0xd3   : > { %1266 = vpow2.f32 %v575_v51  ;;  %v550_v56 = vsub.f32 %v438_v54, %v525_v53  ;;  %v593_v51 = vld [vmem:[#allocation2 + $0x40] sm:$0xff] }
  0xd4   : > { %v1257_v45 = vpop.eup %1256  ;;  %v577_v57 = vmul.f32 1.442695, %v549_v52 }
  0xd5   : > { %604 = vxpose.xlu0.b32.cont [4/16] %v1251_v30, 128  ;;  %v1259_v50 = vpop.eup %1258  ;;  %v530_v58 = vpop.permute.xlu0 %529  ;;  %v579_v61 = vmul.f32 1.442695, %v550_v56  ;;  %v596_v56 = vld [vmem:[#allocation2 + $0x58] sm:$0xff] }
  0xd6   : > { %1268 = vpow2.f32 %v577_v57  ;;  %v551_v62 = vsub.f32 %v439_v59, %v530_v58  ;;  %v535_v63 = vpop.permute.xlu1 %534  ;;  %v595_v57 = vld [vmem:[#allocation2 + $0x50] sm:$0xff] }
  0xd7   : > { %1270 = vpow2.f32 %v579_v61  ;;  %v552_v2 = vsub.f32 %v440_v0, %v535_v63  ;;  %v597_v63 = vld [vmem:[#allocation2 + $0x60] sm:$0xff] }
  0xd8   : > { %v1261_v55 = vpop.eup %1260  ;;  %v581_v3 = vmul.f32 1.442695, %v551_v62  ;;  %v598_v62 = vld [vmem:[#allocation2 + $0x68] sm:$0xff] }
  0xd9   : > { %605 = vxpose.xlu0.b32.cont [5/16] %v1253_v35, 128  ;;  %v1263_v60 = vpop.eup %1262  ;;  %v583_v5 = vmul.f32 1.442695, %v552_v2 }
  0xda   : > { %1272 = vpow2.f32 %v581_v3 }
  0xdb   : > { %1274 = vpow2.f32 %v583_v5  ;;  %v599_v5 = vld [vmem:[#allocation2 + $0x70] sm:$0xff] }
  0xdc   : > { %v1265_v1 = vpop.eup %1264 }
  0xdd   : > { %606 = vxpose.xlu0.b32.cont [6/16] %v1255_v40, 128  ;;  %v1267_v4 = vpop.eup %1266 }
  0xe0   : > { %v1269_v6 = vpop.eup %1268 }
  0xe1   : > { %607 = vxpose.xlu0.b32.cont [7/16] %v1257_v45, 128  ;;  %v1271_v7 = vpop.eup %1270  ;;  %v591_v45 = vld [vmem:[#allocation2 + $0x30] sm:$0xff] }
  0xe4   : > { %v1273_v8 = vpop.eup %1272 }
  0xe5   : > { %608 = vxpose.xlu0.b32.cont [8/16] %v1259_v50, 128  ;;  %v1275_v9 = vpop.eup %1274  ;;  %v594_v50 = vld [vmem:[#allocation2 + $0x48] sm:$0xff] }
  0xe9   : > { %609 = vxpose.xlu0.b32.cont [9/16] %v1261_v55, 128 }
  0xed   : > { %610 = vxpose.xlu0.b32.cont [10/16] %v1263_v60, 128 }
  0xf1   : > { %611 = vxpose.xlu0.b32.cont [11/16] %v1265_v1, 128 }
  0xf5   : > { %612 = vxpose.xlu0.b32.cont [12/16] %v1267_v4, 128  ;;  %v600_v4 = vld [vmem:[#allocation2 + $0x78] sm:$0xff] }
  0xf9   : > { %613 = vxpose.xlu0.b32.cont [13/16] %v1269_v6, 128 }
  0xfd   : > { %614 = vxpose.xlu0.b32.cont [14/16] %v1271_v7, 128 }
 0x101   : > { %615 = vxpose.xlu0.b32.cont [15/16] %v1273_v8, 128 }
 0x105   : > { %616 = vxpose.xlu0.b32.end [16/16] %v1275_v9, 128 }
 0x149   : > { %v617_v10 = vpop.trf.xlu0 }
 0x14a   : > { %1112 = vmatprep.mubr.f32.mxu0 %v617_v10  ;;  %v832_v10 = vld [vmem:[%s1463_s14] sm:$0xff] (!%p1044_p13) }
 0x14d   : > { %v618_v11 = vpop.trf.xlu0 }
 0x14e   : > { %1113 = vmatmul.mubr.f32.vlgmr.msra.gmra.mrb[0].mxu0 %v618_v11  ;;  %v833_v11 = vld [vmem:[%s1463_s14 + $0x8] sm:$0xff] (!%p1044_p13) }
 0x151   : > { %v619_v12 = vpop.trf.xlu0 }
 0x152   : > { %1115 = vmatprep.mubr.f32.mxu0 %v619_v12  ;;  %v834_v12 = vld [vmem:[%s1463_s14 + $0x10] sm:$0xff] (!%p1044_p13) }
 0x155   : > { %v620_v13 = vpop.trf.xlu0 }
 0x156   : > { %1116 = vmatmul.mubr.f32.gmra.mrb[2].mxu0 %v620_v13 }
 0x159   : > { %v621_v14 = vpop.trf.xlu0 }
 0x15a   : > { %1118 = vmatprep.mubr.f32.mxu0 %v621_v14 }
 0x15d   : > { %v622_v15 = vpop.trf.xlu0 }
 0x15e   : > { %1119 = vmatmul.mubr.f32.gmra.mrb[4].mxu0 %v622_v15 }
 0x161   : > { %v623_v16 = vpop.trf.xlu0 }
 0x162   : > { %1121 = vmatprep.mubr.f32.mxu0 %v623_v16  ;;  %v835_v16 = vld [vmem:[%s1463_s14 + $0x18] sm:$0xff] (!%p1044_p13) }
 0x165   : > { %v624_v17 = vpop.trf.xlu0 }
 0x166   : > { %1122 = vmatmul.mubr.f32.gmra.mrb[6].mxu0 %v624_v17 }
 0x169   : > { %v625_v18 = vpop.trf.xlu0 }
 0x16a   : > { %1124 = vmatprep.mubr.f32.mxu1 %v625_v18  ;;  %v836_v18 = vld [vmem:[%s1463_s14 + $0x20] sm:$0xff] (!%p1044_p13) }
 0x16d   : > { %v626_v19 = vpop.trf.xlu0 }
 0x16e   : > { %1125 = vmatmul.mubr.f32.vlgmr.msra.gmra.mrb[0].mxu1 %v626_v19  ;;  %v837_v19 = vld [vmem:[%s1463_s14 + $0x28] sm:$0xff] (!%p1044_p13) }
 0x171   : > { %v627_v20 = vpop.trf.xlu0 }
 0x172   : > { %1127 = vmatprep.mubr.f32.mxu1 %v627_v20  ;;  %v838_v20 = vld [vmem:[%s1463_s14 + $0x30] sm:$0xff] (!%p1044_p13) }
 0x175   : > { %v628_v21 = vpop.trf.xlu0 }
 0x176   : > { %1128 = vmatmul.mubr.f32.gmra.mrb[2].mxu1 %v628_v21  ;;  %v839_v21 = vld [vmem:[%s1463_s14 + $0x38] sm:$0xff] (!%p1044_p13) }
 0x179   : > { %v629_v22 = vpop.trf.xlu0 }
 0x17a   : > { %1130 = vmatprep.mubr.f32.mxu1 %v629_v22  ;;  %v848_v22 = vstv (!%p1044_p13), %s831_s19 }
 0x17d   : > { %v630_v23 = vpop.trf.xlu0 }
 0x17e   : > { %1131 = vmatmul.mubr.f32.gmra.mrb[4].mxu1 %v630_v23 }
 0x181   : > { %v631_v24 = vpop.trf.xlu0 }
 0x182   : > { %1133 = vmatprep.mubr.f32.mxu1 %v631_v24 }
 0x185   : > { %v632_v25 = vpop.trf.xlu0 }
 0x186   : > { %1134 = vmatmul.mubr.f32.gmra.mrb[6].mxu1 %v632_v25 }
 0x221   : > { %v1114_v28 = vpop.f32.mrb[0].mxu0 }
 0x222   : > { %v795_v29 = vadd.f32 %v1114_v28, %v586_v26  ;;  %v715_v30 = vpop.f32.mrb[1].mxu0  ;;  %v849_v26 = vmul.f32 (!%p1044_p13), %v848_v22, %v832_v10  ;;  %v851_v28 = vmul.f32 (!%p1044_p13), %v848_v22, %v834_v12 }
 0x223   : > { %v794_v31 = vadd.f32 %v715_v30, %v585_v27  ;;  %v850_v27 = vmul.f32 (!%p1044_p13), %v848_v22, %v833_v11 }
 0x224   : > { %811 = vst [vmem:[#allocation2 + $0x8] sm:$0xff] %v795_v29  ;;  %v852_v29 = vmul.f32 (!%p1044_p13), %v848_v22, %v835_v16 }
 0x225   : > { %810 = vst [vmem:[#allocation2] sm:$0xff] %v794_v31  ;;  %v840_v31 = vld [vmem:[%s1463_s14 + $0x40] sm:$0xff] (!%p1044_p13) }
 0x229   : > { %v1117_v34 = vpop.f32.mrb[2].mxu0 }
 0x22a   : > { %v797_v35 = vadd.f32 %v1117_v34, %v588_v32  ;;  %v725_v36 = vpop.f32.mrb[3].mxu0  ;;  %v841_v32 = vld [vmem:[%s1463_s14 + $0x48] sm:$0xff] (!%p1044_p13)  ;;  %v854_v34 = vmul.f32 (!%p1044_p13), %v848_v22, %v837_v19 }
 0x22b   : > { %v796_v37 = vadd.f32 %v725_v36, %v587_v33  ;;  %v866_v14 = vld [vmem:[#allocation2 + $0x8] sm:$0xff] (!%p1044_p13)  ;;  %v853_v33 = vmul.f32 (!%p1044_p13), %v848_v22, %v836_v18  ;;  %v856_v36 = vmul.f32 (!%p1044_p13), %v848_v22, %v839_v21 }
 0x22c   : > { %813 = vst [vmem:[#allocation2 + $0x18] sm:$0xff] %v797_v35  ;;  %v865_v13 = vld [vmem:[#allocation2] sm:$0xff] (!%p1044_p13)  ;;  %v855_v35 = vmul.f32 (!%p1044_p13), %v848_v22, %v838_v20 }
 0x22d   : > { %812 = vst [vmem:[#allocation2 + $0x10] sm:$0xff] %v796_v37 }
 0x231   : > { %v1120_v40 = vpop.f32.mrb[4].mxu0 }
 0x232   : > { %v799_v41 = vadd.f32 %v1120_v40, %v590_v38  ;;  %v735_v42 = vpop.f32.mrb[5].mxu0  ;;  %v843_v40 = vld [vmem:[%s1463_s14 + $0x58] sm:$0xff] (!%p1044_p13) }
 0x233   : > { %v798_v43 = vadd.f32 %v735_v42, %v589_v39  ;;  %v868_v17 = vld [vmem:[#allocation2 + $0x18] sm:$0xff] (!%p1044_p13)  ;;  %v842_v39 = vld [vmem:[%s1463_s14 + $0x50] sm:$0xff] (!%p1044_p13)  ;;  %v881_v42 = vadd.f32 (!%p1044_p13), %v865_v13, %v849_v26 }
 0x234   : > { %815 = vst [vmem:[#allocation2 + $0x28] sm:$0xff] %v799_v41  ;;  %v867_v15 = vld [vmem:[#allocation2 + $0x10] sm:$0xff] (!%p1044_p13)  ;;  %v844_v41 = vld [vmem:[%s1463_s14 + $0x60] sm:$0xff] (!%p1044_p13) }
 0x235   : > { %814 = vst [vmem:[#allocation2 + $0x20] sm:$0xff] %v798_v43  ;;  %v882_v43 = vadd.f32 (!%p1044_p13), %v866_v14, %v850_v27  ;;  %897 = vst [vmem:[%s1468_s16] sm:$0xff] (!%p1044_p13), %v881_v42 }
 0x237   : > { %898 = vst [vmem:[%s1468_s16 + $0x8] sm:$0xff] (!%p1044_p13), %v882_v43 }
 0x239   : > { %v1123_v46 = vpop.f32.mrb[6].mxu0 }
 0x23a   : > { %v801_v47 = vadd.f32 %v1123_v46, %v592_v44  ;;  %v745_v48 = vpop.f32.mrb[7].mxu0  ;;  %v883_v44 = vadd.f32 (!%p1044_p13), %v867_v15, %v851_v28  ;;  %v845_v46 = vld [vmem:[%s1463_s14 + $0x68] sm:$0xff] (!%p1044_p13) }
 0x23b   : > { %v800_v49 = vadd.f32 %v745_v48, %v591_v45  ;;  %v870_v24 = vld [vmem:[#allocation2 + $0x28] sm:$0xff] (!%p1044_p13)  ;;  %v884_v45 = vadd.f32 (!%p1044_p13), %v868_v17, %v852_v29  ;;  %v847_v48 = vld [vmem:[%s1463_s14 + $0x78] sm:$0xff] (!%p1044_p13) }
 0x23c   : > { %817 = vst [vmem:[#allocation2 + $0x38] sm:$0xff] %v801_v47  ;;  %v869_v23 = vld [vmem:[#allocation2 + $0x20] sm:$0xff] (!%p1044_p13)  ;;  %v846_v47 = vld [vmem:[%s1463_s14 + $0x70] sm:$0xff] (!%p1044_p13)  ;;  %899 = vst [vmem:[%s1468_s16 + $0x10] sm:$0xff] (!%p1044_p13), %v883_v44 }
 0x23d   : > { %816 = vst [vmem:[#allocation2 + $0x30] sm:$0xff] %v800_v49  ;;  %v885_v49 = vadd.f32 (!%p1044_p13), %v869_v23, %v853_v33  ;;  %900 = vst [vmem:[%s1468_s16 + $0x18] sm:$0xff] (!%p1044_p13), %v884_v45 }
 0x23f   : > { %901 = vst [vmem:[%s1468_s16 + $0x20] sm:$0xff] (!%p1044_p13), %v885_v49 }
 0x241   : > { %v1126_v52 = vpop.f32.mrb[0].mxu1 }
 0x242   : > { %v803_v53 = vadd.f32 %v1126_v52, %v594_v50  ;;  %v755_v54 = vpop.f32.mrb[1].mxu1  ;;  %v886_v50 = vadd.f32 (!%p1044_p13), %v870_v24, %v854_v34 }
 0x243   : > { %v802_v55 = vadd.f32 %v755_v54, %v593_v51  ;;  %v872_v30 = vld [vmem:[#allocation2 + $0x38] sm:$0xff] (!%p1044_p13) }
 0x244   : > { %819 = vst [vmem:[#allocation2 + $0x48] sm:$0xff] %v803_v53  ;;  %v871_v25 = vld [vmem:[#allocation2 + $0x30] sm:$0xff] (!%p1044_p13)  ;;  %v888_v52 = vadd.f32 (!%p1044_p13), %v872_v30, %v856_v36  ;;  %902 = vst [vmem:[%s1468_s16 + $0x28] sm:$0xff] (!%p1044_p13), %v886_v50 }
 0x245   : > { %818 = vst [vmem:[#allocation2 + $0x40] sm:$0xff] %v802_v55  ;;  %v887_v51 = vadd.f32 (!%p1044_p13), %v871_v25, %v855_v35 }
 0x246   : > { %904 = vst [vmem:[%s1468_s16 + $0x38] sm:$0xff] (!%p1044_p13), %v888_v52 }
 0x247   : > { %903 = vst [vmem:[%s1468_s16 + $0x30] sm:$0xff] (!%p1044_p13), %v887_v51 }
 0x249   : > { %v1129_v58 = vpop.f32.mrb[2].mxu1 }
 0x24a   : > { %v805_v59 = vadd.f32 %v1129_v58, %v596_v56  ;;  %v765_v60 = vpop.f32.mrb[3].mxu1  ;;  %v857_v56 = vmul.f32 (!%p1044_p13), %v848_v22, %v840_v31  ;;  %v859_v58 = vmul.f32 (!%p1044_p13), %v848_v22, %v842_v39 }
 0x24b   : > { %v804_v61 = vadd.f32 %v765_v60, %v595_v57  ;;  %v874_v38 = vld [vmem:[#allocation2 + $0x48] sm:$0xff] (!%p1044_p13)  ;;  %v858_v57 = vmul.f32 (!%p1044_p13), %v848_v22, %v841_v32 }
 0x24c   : > { %821 = vst [vmem:[#allocation2 + $0x58] sm:$0xff] %v805_v59  ;;  %v873_v37 = vld [vmem:[#allocation2 + $0x40] sm:$0xff] (!%p1044_p13)  ;;  %v860_v59 = vmul.f32 (!%p1044_p13), %v848_v22, %v843_v40 }
 0x24d   : > { %820 = vst [vmem:[#allocation2 + $0x50] sm:$0xff] %v804_v61 }
 0x251   : > { %v1132_v0 = vpop.f32.mrb[4].mxu1 }
 0x252   : > { %v807_v1 = vadd.f32 %v1132_v0, %v598_v62  ;;  %v775_v2 = vpop.f32.mrb[5].mxu1  ;;  %v862_v0 = vmul.f32 (!%p1044_p13), %v848_v22, %v845_v46 }
 0x253   : > { %v806_v3 = vadd.f32 %v775_v2, %v597_v63  ;;  %v876_v54 = vld [vmem:[#allocation2 + $0x58] sm:$0xff] (!%p1044_p13)  ;;  %v861_v63 = vmul.f32 (!%p1044_p13), %v848_v22, %v844_v41  ;;  %v864_v2 = vmul.f32 (!%p1044_p13), %v848_v22, %v847_v48 }
 0x254   : > { %823 = vst [vmem:[#allocation2 + $0x68] sm:$0xff] %v807_v1  ;;  %v875_v53 = vld [vmem:[#allocation2 + $0x50] sm:$0xff] (!%p1044_p13)  ;;  %v863_v1 = vmul.f32 (!%p1044_p13), %v848_v22, %v846_v47 }
 0x255   : > { %822 = vst [vmem:[#allocation2 + $0x60] sm:$0xff] %v806_v3  ;;  %v889_v3 = vadd.f32 (!%p1044_p13), %v873_v37, %v857_v56 }
 0x257   : > { %829 = sbr.rel (%p1044_p13) target bundleno = 616 (0x268), region = 86  ;;  %905 = vst [vmem:[%s1468_s16 + $0x40] sm:$0xff] (!%p1044_p13), %v889_v3 }
 0x259   : > { %v1135_v6 = vpop.f32.mrb[6].mxu1 }
 0x25a   : > { %v809_v7 = vadd.f32 %v1135_v6, %v600_v4  ;;  %v785_v8 = vpop.f32.mrb[7].mxu1  ;;  %v890_v4 = vadd.f32 (!%p1044_p13), %v874_v38, %v858_v57  ;;  %v892_v6 = vadd.f32 (!%p1044_p13), %v876_v54, %v860_v59 }
 0x25b   : > { %v808_v9 = vadd.f32 %v785_v8, %v599_v5  ;;  %v878_v60 = vld [vmem:[#allocation2 + $0x68] sm:$0xff] (!%p1044_p13)  ;;  %v891_v5 = vadd.f32 (!%p1044_p13), %v875_v53, %v859_v58 }
 0x25c   : > { %825 = vst [vmem:[#allocation2 + $0x78] sm:$0xff] %v809_v7  ;;  %v877_v55 = vld [vmem:[#allocation2 + $0x60] sm:$0xff] (!%p1044_p13)  ;;  %v894_v8 = vadd.f32 (!%p1044_p13), %v878_v60, %v862_v0  ;;  %906 = vst [vmem:[%s1468_s16 + $0x48] sm:$0xff] (!%p1044_p13), %v890_v4 }
 0x25d   : > { %824 = vst [vmem:[#allocation2 + $0x70] sm:$0xff] %v808_v9  ;;  %v893_v7 = vadd.f32 (!%p1044_p13), %v877_v55, %v861_v63  ;;  %907 = vst [vmem:[%s1468_s16 + $0x50] sm:$0xff] (!%p1044_p13), %v891_v5 }
 0x25e   : > { %908 = vst [vmem:[%s1468_s16 + $0x58] sm:$0xff] %v892_v6  ;;  %910 = vst [vmem:[%s1468_s16 + $0x68] sm:$0xff] %v894_v8 }
 0x25f   : > { %909 = vst [vmem:[%s1468_s16 + $0x60] sm:$0xff] %v893_v7 }
 0x263   : > { %v880_v62 = vld [vmem:[#allocation2 + $0x78] sm:$0xff] }
 0x264   : > { %v879_v61 = vld [vmem:[#allocation2 + $0x70] sm:$0xff]  ;;  %v896_v10 = vadd.f32 %v880_v62, %v864_v2 }
 0x265   : > { %v895_v9 = vadd.f32 %v879_v61, %v863_v1 }
 0x266   : > { %912 = vst [vmem:[%s1468_s16 + $0x78] sm:$0xff] %v896_v10 }
 0x267   : > { %911 = vst [vmem:[%s1468_s16 + $0x70] sm:$0xff] %v895_v9 }
 0x268 PF: > { %s16_s26 = sadd.s32 1, %s1330_s26   ;;  %s1581_s20 = smov %s1310_s21 }
 0x269   : > { %p13_p0 = scmp.ge.s32.totalorder %s16_s26, 6   ;;  %s1582_s21 = smov %s1418_s7 }
 0x26a   : > { %s1583_s22 = smov %s1322_s24  ;;  %s1584_s23 = smov %s1326_s25 }
 0x26b   : > { %s1585_s24 = smov %s1588_s4  ;;  %s1586_s25 = smov %s1592_s27 }
 0x26c   :  { %15 = sbr.rel (!%p13_p0) target bundleno = 6 (0x6), region = 130 }

</bundles_post_ra>
